<compile_context>
chip_gen: v5e
topology: v5e:2x2
jax: 0.10.0
libtpu: 0.0.40
codegen_flags: <defaults>
</compile_context>

<pallas_src>
import jax
import jax.numpy as jnp
from jax.experimental import pallas as pl
from jax.experimental.pallas import tpu as pltpu


def decoder_kernel(
    emb_ref,       # [Bp, EMBp]        bf16  embedded token (dropout == identity)
    hid_ref,       # [Bp, HDp]         f32   previous decoder hidden state
    enc_ref,       # [Bp, S, E2p]      bf16  encoder outputs (batch-major)
    wa_h_ref,      # [HDp, HDp]        bf16  attention weight, hidden part (transposed)
    wa_e_ref,      # [E2p, HDp]        bf16  attention weight, encoder part (transposed)
    attn_bv_ref,   # [2, HDp]          f32   row 0 = attention bias, row 1 = attention v
    w_ih_ref,      # [EMBp+E2p, 3*HDp] bf16  fused GRU W_ih (rows: emb | weighted; cols: r|z|n)
    w_hh_ref,      # [HDp, 3*HDp]      bf16  fused GRU W_hh (cols: r|z|n)
    gru_b_ref,     # [2, 3*HDp]        f32   row 0 = b_ih, row 1 = b_hh (gate-padded)
    w_fc_ref,      # [HDp+E2p+EMBp, Op] bf16 fused fc_out weight (rows: h_new | weighted | emb)
    fc_b_ref,      # [1, Op]           f32
    pred_ref,      # out [Bp, Op]      f32
    hidn_ref,      # out [Bp, HDp]     f32
):
    Bp, S, E2p = enc_ref.shape
    HDp = hid_ref.shape[-1]

    emb = emb_ref[...]                       # bf16
    hid = hid_ref[...]                       # f32 (kept f32 for the GRU blend)
    hid_bf = hid.astype(jnp.bfloat16)
    enc = enc_ref[...]                       # bf16

    # ---------------- additive (Bahdanau) attention ----------------
    hh = jnp.dot(hid_bf, wa_h_ref[...], preferred_element_type=jnp.float32)      # [Bp, HDp]
    ee = jnp.dot(enc.reshape(Bp * S, E2p), wa_e_ref[...],
                 preferred_element_type=jnp.float32)                             # [Bp*S, HDp]
    bv = attn_bv_ref[...]
    ba = bv[0:1, :]                                                              # [1, HDp]
    v = bv[1:2, :]                                                               # [1, HDp]

    energy = jnp.tanh(ee.reshape(Bp, S, HDp) + hh[:, None, :] + ba[None, :, :])  # [Bp, S, HDp]
    scores = jnp.sum(energy * v[None, :, :], axis=-1)                            # [Bp, S]  (VPU+XLU)
    m = jnp.max(scores, axis=-1, keepdims=True)
    p = jnp.exp(scores - m)
    attn = p * pl.reciprocal(jnp.sum(p, axis=-1, keepdims=True), approx=True)    # softmax over S
    weighted = jnp.sum(attn[:, :, None] * enc.astype(jnp.float32), axis=1)       # [Bp, E2p] f32

    # ---------------- single-step GRU cell (gates fused) ----------------
    gb = gru_b_ref[...]
    rnn_in = jnp.concatenate([emb, weighted.astype(jnp.bfloat16)], axis=-1)      # [Bp, EMBp+E2p]
    gi = jnp.dot(rnn_in, w_ih_ref[...], preferred_element_type=jnp.float32) + gb[0:1, :]
    gh = jnp.dot(hid_bf, w_hh_ref[...], preferred_element_type=jnp.float32) + gb[1:2, :]

    r = jax.nn.sigmoid(gi[:, :HDp] + gh[:, :HDp])
    z = jax.nn.sigmoid(gi[:, HDp:2 * HDp] + gh[:, HDp:2 * HDp])
    n = jnp.tanh(gi[:, 2 * HDp:] + r * gh[:, 2 * HDp:])
    h_new = (1.0 - z) * n + z * hid                                              # [Bp, HDp] f32

    # ---------------- fc_out( cat(output, weighted, embedded) ) ----------------
    fc_in = jnp.concatenate([h_new.astype(jnp.bfloat16),
                             weighted.astype(jnp.bfloat16), emb], axis=-1)       # [Bp, HDp+E2p+EMBp]
    pred = jnp.dot(fc_in, w_fc_ref[...], preferred_element_type=jnp.float32) + fc_b_ref[...]

    pred_ref[...] = pred
    hidn_ref[...] = h_new


def decoder_forward(params, tokens, hidden, enc_outputs):
    """tokens: [B] int32, hidden: [B, HD], enc_outputs: [S, B, E2] (PyTorch layout)."""
    B = tokens.shape[0]
    S, _, E2 = enc_outputs.shape
    HD = hidden.shape[1]
    EMB = params["emb_table"].shape[1]
    O = params["fc_w"].shape[0]

    LANE, SUB = 128, 8
    rup = lambda n, m: ((n + m - 1) // m) * m
    Bp = rup(B, SUB)
    EMBp, HDp, E2p, Op = rup(EMB, LANE), rup(HD, LANE), rup(E2, LANE), rup(O, LANE)
    wdt = jnp.bfloat16

    # ---- glue: embedding lookup, layout changes, weight packing / padding ----
    emb = jnp.take(params["emb_table"], tokens, axis=0)                     # [B, EMB]
    emb_p = jnp.zeros((Bp, EMBp), wdt).at[:B, :EMB].set(emb.astype(wdt))
    hid_p = jnp.zeros((Bp, HDp), jnp.float32).at[:B, :HD].set(hidden.astype(jnp.float32))
    enc_b = jnp.transpose(enc_outputs, (1, 0, 2))                           # [B, S, E2]
    enc_p = jnp.zeros((Bp, S, E2p), wdt).at[:B, :, :E2].set(enc_b.astype(wdt))

    # attention weights (cat order in reference: hidden, enc) -> transposed [in, out]
    wa = params["attn_w"]                                                   # [HD, HD+E2]
    wa_h_p = jnp.zeros((HDp, HDp), wdt).at[:HD, :HD].set(wa[:, :HD].T.astype(wdt))
    wa_e_p = jnp.zeros((E2p, HDp), wdt).at[:E2, :HD].set(wa[:, HD:].T.astype(wdt))
    attn_bv = jnp.zeros((2, HDp), jnp.float32)
    attn_bv = attn_bv.at[0, :HD].set(params["attn_b"])
    attn_bv = attn_bv.at[1, :HD].set(params["attn_v"].reshape(-1))

    # fused GRU weights. PyTorch gate order: r, z, n.  rnn_input = cat(emb, weighted).
    wih, whh = params["gru_w_ih"], params["gru_w_hh"]                       # [3HD, EMB+E2], [3HD, HD]
    bih, bhh = params["gru_b_ih"], params["gru_b_hh"]
    w_ih_p = jnp.zeros((EMBp + E2p, 3 * HDp), wdt)
    w_hh_p = jnp.zeros((HDp, 3 * HDp), wdt)
    gru_b = jnp.zeros((2, 3 * HDp), jnp.float32)
    for g in range(3):
        wg = wih[g * HD:(g + 1) * HD, :]                                    # [HD, EMB+E2]
        w_ih_p = w_ih_p.at[:EMB, g * HDp:g * HDp + HD].set(wg[:, :EMB].T.astype(wdt))
        w_ih_p = w_ih_p.at[EMBp:EMBp + E2, g * HDp:g * HDp + HD].set(wg[:, EMB:].T.astype(wdt))
        w_hh_p = w_hh_p.at[:HD, g * HDp:g * HDp + HD].set(
            whh[g * HD:(g + 1) * HD, :].T.astype(wdt))
        gru_b = gru_b.at[0, g * HDp:g * HDp + HD].set(bih[g * HD:(g + 1) * HD])
        gru_b = gru_b.at[1, g * HDp:g * HDp + HD].set(bhh[g * HD:(g + 1) * HD])

    # fused fc_out weight (cat order in reference: output, weighted, embedded)
    wfc = params["fc_w"]                                                    # [O, HD+E2+EMB]
    w_fc_p = jnp.zeros((HDp + E2p + EMBp, Op), wdt)
    w_fc_p = w_fc_p.at[:HD, :O].set(wfc[:, :HD].T.astype(wdt))
    w_fc_p = w_fc_p.at[HDp:HDp + E2, :O].set(wfc[:, HD:HD + E2].T.astype(wdt))
    w_fc_p = w_fc_p.at[HDp + E2p:HDp + E2p + EMB, :O].set(wfc[:, HD + E2:].T.astype(wdt))
    fc_b = jnp.zeros((1, Op), jnp.float32).at[0, :O].set(params["fc_b"])

    args = (emb_p, hid_p, enc_p, wa_h_p, wa_e_p, attn_bv,
            w_ih_p, w_hh_p, gru_b, w_fc_p, fc_b)

    pred_p, hidn_p = pl.pallas_call(
        decoder_kernel,
        out_shape=(jax.ShapeDtypeStruct((Bp, Op), jnp.float32),
                   jax.ShapeDtypeStruct((Bp, HDp), jnp.float32)),
        in_specs=[pl.BlockSpec(memory_space=pltpu.MemorySpace.VMEM)] * len(args),
        out_specs=(pl.BlockSpec(memory_space=pltpu.MemorySpace.VMEM),
                   pl.BlockSpec(memory_space=pltpu.MemorySpace.VMEM)),
    )(*args)

    return pred_p[:B, :O], hidn_p[:B, :HD]


def decoder_reference(params, tokens, hidden, enc_outputs):
    """Pure-JAX f32 reference mirroring the PyTorch forward exactly."""
    HD = hidden.shape[1]
    S = enc_outputs.shape[0]

    emb = params["emb_table"][tokens]                               # [B, EMB]
    enc_b = jnp.transpose(enc_outputs, (1, 0, 2))                   # [B, S, E2]
    hid_rep = jnp.repeat(hidden[:, None, :], S, axis=1)             # [B, S, HD]
    cat = jnp.concatenate([hid_rep, enc_b], axis=2)
    energy = jnp.tanh(cat @ params["attn_w"].T + params["attn_b"])
    scores = jnp.einsum("bsh,h->bs", energy, params["attn_v"].reshape(-1))
    a = jax.nn.softmax(scores, axis=1)
    weighted = jnp.einsum("bs,bse->be", a, enc_b)

    x = jnp.concatenate([emb, weighted], axis=1)
    gi = x @ params["gru_w_ih"].T + params["gru_b_ih"]
    gh = hidden @ params["gru_w_hh"].T + params["gru_b_hh"]
    r = jax.nn.sigmoid(gi[:, :HD] + gh[:, :HD])
    z = jax.nn.sigmoid(gi[:, HD:2 * HD] + gh[:, HD:2 * HD])
    n = jnp.tanh(gi[:, 2 * HD:] + r * gh[:, 2 * HD:])
    h_new = (1.0 - z) * n + z * hidden

    pred = (jnp.concatenate([h_new, weighted, emb], axis=1) @ params["fc_w"].T
            + params["fc_b"])
    return pred, h_new


def init_params(key, output_dim, embed_dim, enc_hidden_dim, dec_hidden_dim):
    E2 = enc_hidden_dim * 2
    HD = dec_hidden_dim
    ks = jax.random.split(key, 12)
    u = lambda k, shape: jax.random.uniform(k, shape, jnp.float32, -0.1, 0.1)
    return {
        "emb_table": u(ks[0], (output_dim, embed_dim)),
        "attn_w":    u(ks[1], (HD, HD + E2)),
        "attn_b":    u(ks[2], (HD,)),
        "attn_v":    u(ks[3], (1, HD)),
        "gru_w_ih":  u(ks[4], (3 * HD, embed_dim + E2)),
        "gru_w_hh":  u(ks[5], (3 * HD, HD)),
        "gru_b_ih":  u(ks[6], (3 * HD,)),
        "gru_b_hh":  u(ks[7], (3 * HD,)),
        "fc_w":      u(ks[8], (output_dim, HD + E2 + embed_dim)),
        "fc_b":      u(ks[9], (output_dim,)),
    }


if __name__ == "__main__":
    # small, forward-consistent shapes
    B, S = 4, 8
    output_dim, embed_dim, enc_hidden_dim, dec_hidden_dim = 24, 16, 32, 32
    E2 = enc_hidden_dim * 2

    key = jax.random.PRNGKey(0)
    kp, kt, kh, ke = jax.random.split(key, 4)
    params = init_params(kp, output_dim, embed_dim, enc_hidden_dim, dec_hidden_dim)

    tokens = jax.random.randint(kt, (B,), 0, output_dim, dtype=jnp.int32)      # input
    hidden = jax.random.normal(kh, (B, dec_hidden_dim), jnp.float32)           # hidden
    enc_outputs = jax.random.normal(ke, (S, B, E2), jnp.float32)               # enc_outputs

    pred, hid_new = decoder_forward(params, tokens, hidden, enc_outputs)
    pred = jax.block_until_ready(pred)
    hid_new = jax.block_until_ready(hid_new)

    pred_ref, hid_ref = decoder_reference(params, tokens, hidden, enc_outputs)
    assert pred.shape == (B, output_dim) and hid_new.shape == (B, dec_hidden_dim)
    # bf16 weights/activations with f32 accumulation -> loosened tolerance
    assert jnp.allclose(pred, pred_ref, atol=2e-2, rtol=2e-2), \
        float(jnp.max(jnp.abs(pred - pred_ref)))
    assert jnp.allclose(hid_new, hid_ref, atol=2e-2, rtol=2e-2), \
        float(jnp.max(jnp.abs(hid_new - hid_ref)))

    print("KERNEL_OK")
</pallas_src>

<mosaic_0001>
module attributes {stable_mosaic.version = 11 : i64} {
  func.func @decoder_kernel(%arg0: memref<8x128xbf16, #tpu.memory_space<vmem>>, %arg1: memref<8x128xf32, #tpu.memory_space<vmem>>, %arg2: memref<8x8x128xbf16, #tpu.memory_space<vmem>>, %arg3: memref<128x128xbf16, #tpu.memory_space<vmem>>, %arg4: memref<128x128xbf16, #tpu.memory_space<vmem>>, %arg5: memref<2x128xf32, #tpu.memory_space<vmem>>, %arg6: memref<256x384xbf16, #tpu.memory_space<vmem>>, %arg7: memref<128x384xbf16, #tpu.memory_space<vmem>>, %arg8: memref<2x384xf32, #tpu.memory_space<vmem>>, %arg9: memref<384x128xbf16, #tpu.memory_space<vmem>>, %arg10: memref<1x128xf32, #tpu.memory_space<vmem>>, %arg11: memref<8x128xf32, #tpu.memory_space<vmem>>, %arg12: memref<8x128xf32, #tpu.memory_space<vmem>>) attributes {dimension_semantics = [], scalar_prefetch = 0 : i64, scratch_operands = 0 : i64, tpu.core_type = #tpu.core_type<tc>} {
    %c0 = arith.constant 0 : index
    %c0_0 = arith.constant 0 : index
    %0 = vector.load %arg0[%c0, %c0_0] : memref<8x128xbf16, #tpu.memory_space<vmem>>, vector<8x128xbf16>
    %c0_1 = arith.constant 0 : index
    %c0_2 = arith.constant 0 : index
    %1 = vector.load %arg1[%c0_1, %c0_2] : memref<8x128xf32, #tpu.memory_space<vmem>>, vector<8x128xf32>
    %2 = arith.truncf %1 : vector<8x128xf32> to vector<8x128xbf16>
    %c0_3 = arith.constant 0 : index
    %c0_4 = arith.constant 0 : index
    %c0_5 = arith.constant 0 : index
    %3 = vector.load %arg2[%c0_3, %c0_4, %c0_5] : memref<8x8x128xbf16, #tpu.memory_space<vmem>>, vector<8x8x128xbf16>
    %c0_6 = arith.constant 0 : index
    %c0_7 = arith.constant 0 : index
    %4 = vector.load %arg3[%c0_6, %c0_7] : memref<128x128xbf16, #tpu.memory_space<vmem>>, vector<128x128xbf16>
    %cst = arith.constant dense<0.000000e+00> : vector<8x128xf32>
    %5 = tpu.matmul %2, %4, %cst {dimension_numbers = #tpu.dot_dimension_numbers<[1], [0], [0], [1], [0, 0, 1, 1], [], []>} : vector<8x128xbf16>, vector<128x128xbf16>, vector<8x128xf32> -> vector<8x128xf32>
    %6 = vector.shape_cast %3 : vector<8x8x128xbf16> to vector<64x128xbf16>
    %c0_8 = arith.constant 0 : index
    %c0_9 = arith.constant 0 : index
    %7 = vector.load %arg4[%c0_8, %c0_9] : memref<128x128xbf16, #tpu.memory_space<vmem>>, vector<128x128xbf16>
    %cst_10 = arith.constant dense<0.000000e+00> : vector<64x128xf32>
    %8 = tpu.matmul %6, %7, %cst_10 {dimension_numbers = #tpu.dot_dimension_numbers<[1], [0], [0], [1], [0, 0, 1, 1], [], []>} : vector<64x128xbf16>, vector<128x128xbf16>, vector<64x128xf32> -> vector<64x128xf32>
    %c0_11 = arith.constant 0 : index
    %c0_12 = arith.constant 0 : index
    %9 = vector.load %arg5[%c0_11, %c0_12] : memref<2x128xf32, #tpu.memory_space<vmem>>, vector<2x128xf32>
    %10 = vector.extract_strided_slice %9 {offsets = [0, 0], sizes = [1, 128], strides = [1, 1]} : vector<2x128xf32> to vector<1x128xf32>
    %11 = vector.extract_strided_slice %9 {offsets = [1, 0], sizes = [1, 128], strides = [1, 1]} : vector<2x128xf32> to vector<1x128xf32>
    %12 = vector.shape_cast %8 : vector<64x128xf32> to vector<8x8x128xf32>
    %13 = vector.shape_cast %5 : vector<8x128xf32> to vector<8x1x128xf32>
    %14 = vector.broadcast %13 : vector<8x1x128xf32> to vector<8x8x128xf32>
    %15 = arith.addf %12, %14 : vector<8x8x128xf32>
    %16 = vector.shape_cast %10 : vector<1x128xf32> to vector<1x1x128xf32>
    %17 = vector.broadcast %16 : vector<1x1x128xf32> to vector<8x8x128xf32>
    %18 = arith.addf %15, %17 : vector<8x8x128xf32>
    %19 = math.tanh %18 : vector<8x8x128xf32>
    %20 = vector.shape_cast %11 : vector<1x128xf32> to vector<1x1x128xf32>
    %21 = vector.broadcast %20 : vector<1x1x128xf32> to vector<8x8x128xf32>
    %22 = arith.mulf %19, %21 : vector<8x8x128xf32>
    %cst_13 = arith.constant dense<0.000000e+00> : vector<8x8xf32>
    %23 = vector.multi_reduction <add>, %22, %cst_13 [2] : vector<8x8x128xf32> to vector<8x8xf32>
    %cst_14 = arith.constant dense<0xFF800000> : vector<8xf32>
    %24 = vector.multi_reduction <maximumf>, %23, %cst_14 [1] : vector<8x8xf32> to vector<8xf32>
    %25 = vector.shape_cast %24 : vector<8xf32> to vector<8x1xf32>
    %26 = vector.broadcast %25 : vector<8x1xf32> to vector<8x8xf32>
    %27 = arith.subf %23, %26 : vector<8x8xf32>
    %28 = math.exp %27 : vector<8x8xf32>
    %cst_15 = arith.constant dense<0.000000e+00> : vector<8xf32>
    %29 = vector.multi_reduction <add>, %28, %cst_15 [1] : vector<8x8xf32> to vector<8xf32>
    %30 = vector.shape_cast %29 : vector<8xf32> to vector<8x1xf32>
    %31 = tpu.reciprocal %30 {approx = true} : vector<8x1xf32> -> vector<8x1xf32>
    %32 = vector.broadcast %31 : vector<8x1xf32> to vector<8x8xf32>
    %33 = arith.mulf %28, %32 : vector<8x8xf32>
    %34 = vector.shape_cast %33 : vector<8x8xf32> to vector<8x8x1xf32>
    %35 = arith.extf %3 : vector<8x8x128xbf16> to vector<8x8x128xf32>
    %36 = vector.broadcast %34 : vector<8x8x1xf32> to vector<8x8x128xf32>
    %37 = arith.mulf %36, %35 : vector<8x8x128xf32>
    %cst_16 = arith.constant dense<0.000000e+00> : vector<8x128xf32>
    %38 = vector.multi_reduction <add>, %37, %cst_16 [1] : vector<8x8x128xf32> to vector<8x128xf32>
    %c0_17 = arith.constant 0 : index
    %c0_18 = arith.constant 0 : index
    %39 = vector.load %arg8[%c0_17, %c0_18] : memref<2x384xf32, #tpu.memory_space<vmem>>, vector<2x384xf32>
    %40 = arith.truncf %38 : vector<8x128xf32> to vector<8x128xbf16>
    %41 = tpu.concatenate %0, %40 in 1 : vector<8x128xbf16>, vector<8x128xbf16> -> vector<8x256xbf16>
    %c0_19 = arith.constant 0 : index
    %c0_20 = arith.constant 0 : index
    %42 = vector.load %arg6[%c0_19, %c0_20] : memref<256x384xbf16, #tpu.memory_space<vmem>>, vector<256x384xbf16>
    %cst_21 = arith.constant dense<0.000000e+00> : vector<8x384xf32>
    %43 = tpu.matmul %41, %42, %cst_21 {dimension_numbers = #tpu.dot_dimension_numbers<[1], [0], [0], [1], [0, 0, 1, 1], [], []>} : vector<8x256xbf16>, vector<256x384xbf16>, vector<8x384xf32> -> vector<8x384xf32>
    %44 = vector.extract_strided_slice %39 {offsets = [0, 0], sizes = [1, 384], strides = [1, 1]} : vector<2x384xf32> to vector<1x384xf32>
    %45 = vector.broadcast %44 : vector<1x384xf32> to vector<8x384xf32>
    %46 = arith.addf %43, %45 : vector<8x384xf32>
    %c0_22 = arith.constant 0 : index
    %c0_23 = arith.constant 0 : index
    %47 = vector.load %arg7[%c0_22, %c0_23] : memref<128x384xbf16, #tpu.memory_space<vmem>>, vector<128x384xbf16>
    %cst_24 = arith.constant dense<0.000000e+00> : vector<8x384xf32>
    %48 = tpu.matmul %2, %47, %cst_24 {dimension_numbers = #tpu.dot_dimension_numbers<[1], [0], [0], [1], [0, 0, 1, 1], [], []>} : vector<8x128xbf16>, vector<128x384xbf16>, vector<8x384xf32> -> vector<8x384xf32>
    %49 = vector.extract_strided_slice %39 {offsets = [1, 0], sizes = [1, 384], strides = [1, 1]} : vector<2x384xf32> to vector<1x384xf32>
    %50 = vector.broadcast %49 : vector<1x384xf32> to vector<8x384xf32>
    %51 = arith.addf %48, %50 : vector<8x384xf32>
    %52 = vector.extract_strided_slice %46 {offsets = [0, 0], sizes = [8, 128], strides = [1, 1]} : vector<8x384xf32> to vector<8x128xf32>
    %53 = vector.extract_strided_slice %51 {offsets = [0, 0], sizes = [8, 128], strides = [1, 1]} : vector<8x384xf32> to vector<8x128xf32>
    %54 = arith.addf %52, %53 : vector<8x128xf32>
    %55 = arith.negf %54 : vector<8x128xf32>
    %56 = math.exp %55 : vector<8x128xf32>
    %cst_25 = arith.constant 1.000000e+00 : f32
    %57 = vector.broadcast %cst_25 : f32 to vector<8x128xf32>
    %58 = arith.addf %57, %56 : vector<8x128xf32>
    %59 = arith.divf %57, %58 : vector<8x128xf32>
    %60 = vector.extract_strided_slice %46 {offsets = [0, 128], sizes = [8, 128], strides = [1, 1]} : vector<8x384xf32> to vector<8x128xf32>
    %61 = vector.extract_strided_slice %51 {offsets = [0, 128], sizes = [8, 128], strides = [1, 1]} : vector<8x384xf32> to vector<8x128xf32>
    %62 = arith.addf %60, %61 : vector<8x128xf32>
    %63 = arith.negf %62 : vector<8x128xf32>
    %64 = math.exp %63 : vector<8x128xf32>
    %cst_26 = arith.constant 1.000000e+00 : f32
    %65 = vector.broadcast %cst_26 : f32 to vector<8x128xf32>
    %66 = arith.addf %65, %64 : vector<8x128xf32>
    %67 = arith.divf %65, %66 : vector<8x128xf32>
    %68 = vector.extract_strided_slice %46 {offsets = [0, 256], sizes = [8, 128], strides = [1, 1]} : vector<8x384xf32> to vector<8x128xf32>
    %69 = vector.extract_strided_slice %51 {offsets = [0, 256], sizes = [8, 128], strides = [1, 1]} : vector<8x384xf32> to vector<8x128xf32>
    %70 = arith.mulf %59, %69 : vector<8x128xf32>
    %71 = arith.addf %68, %70 : vector<8x128xf32>
    %72 = math.tanh %71 : vector<8x128xf32>
    %cst_27 = arith.constant 1.000000e+00 : f32
    %73 = vector.broadcast %cst_27 : f32 to vector<8x128xf32>
    %74 = arith.subf %73, %67 : vector<8x128xf32>
    %75 = arith.mulf %74, %72 : vector<8x128xf32>
    %76 = arith.mulf %67, %1 : vector<8x128xf32>
    %77 = arith.addf %75, %76 : vector<8x128xf32>
    %78 = arith.truncf %77 : vector<8x128xf32> to vector<8x128xbf16>
    %79 = arith.truncf %38 : vector<8x128xf32> to vector<8x128xbf16>
    %80 = tpu.concatenate %78, %79, %0 in 1 : vector<8x128xbf16>, vector<8x128xbf16>, vector<8x128xbf16> -> vector<8x384xbf16>
    %c0_28 = arith.constant 0 : index
    %c0_29 = arith.constant 0 : index
    %81 = vector.load %arg9[%c0_28, %c0_29] : memref<384x128xbf16, #tpu.memory_space<vmem>>, vector<384x128xbf16>
    %cst_30 = arith.constant dense<0.000000e+00> : vector<8x128xf32>
    %82 = tpu.matmul %80, %81, %cst_30 {dimension_numbers = #tpu.dot_dimension_numbers<[1], [0], [0], [1], [0, 0, 1, 1], [], []>} : vector<8x384xbf16>, vector<384x128xbf16>, vector<8x128xf32> -> vector<8x128xf32>
    %c0_31 = arith.constant 0 : index
    %c0_32 = arith.constant 0 : index
    %83 = vector.load %arg10[%c0_31, %c0_32] : memref<1x128xf32, #tpu.memory_space<vmem>>, vector<1x128xf32>
    %84 = vector.broadcast %83 : vector<1x128xf32> to vector<8x128xf32>
    %85 = arith.addf %82, %84 : vector<8x128xf32>
    %c0_33 = arith.constant 0 : index
    %c0_34 = arith.constant 0 : index
    %86 = vector.load %arg11[%c0_33, %c0_34] : memref<8x128xf32, #tpu.memory_space<vmem>>, vector<8x128xf32>
    tpu.vector_store %arg11[%c0_33, %c0_34], %85 {strides = array<i32>} : memref<8x128xf32, #tpu.memory_space<vmem>>, vector<8x128xf32>,
    %c0_35 = arith.constant 0 : index
    %c0_36 = arith.constant 0 : index
    %87 = vector.load %arg12[%c0_35, %c0_36] : memref<8x128xf32, #tpu.memory_space<vmem>>, vector<8x128xf32>
    tpu.vector_store %arg12[%c0_35, %c0_36], %77 {strides = array<i32>} : memref<8x128xf32, #tpu.memory_space<vmem>>, vector<8x128xf32>,
    return
  }
}

</mosaic_0001>

<bundles_post_ra>
// kernel: tpu_custom_call.1
= control target key start
LH: loop header
LB: loop body
LE: loop exit
PB: predicated region body
PF: predicated region fallthrough
CT: control target
= control target key end

     0   :  { %18 = vsyncpa [#allocation3], 0  ;;  %s2897_s0 = inlined_call_operand.hbm [shape: bf16[8,128], index: 0, kind: input, shape index: {}]   ;;  %s2898_s1 = inlined_call_operand.hbm [shape: f32[8,128], index: 1, kind: input, shape index: {}]   ;;  %s2899_s2 = inlined_call_operand.hbm [shape: bf16[8,8,128], index: 2, kind: input, shape index: {}]   ;;  %s2900_s3 = inlined_call_operand.hbm [shape: bf16[128,128], index: 3, kind: input, shape index: {}]   ;;  %s2901_s4 = inlined_call_operand.hbm [shape: bf16[128,128], index: 4, kind: input, shape index: {}]   ;;  %s2902_s5 = inlined_call_operand.hbm [shape: f32[2,128], index: 5, kind: input, shape index: {}]   ;;  %s2903_s6 = inlined_call_operand.hbm [shape: bf16[256,384], index: 6, kind: input, shape index: {}]   ;;  %s2904_s7 = inlined_call_operand.hbm [shape: bf16[128,384], index: 7, kind: input, shape index: {}]   ;;  %s2905_s8 = inlined_call_operand.vmem [shape: f32[2,384], index: 8, kind: input, shape index: {}]   ;;  %s2906_s9 = inlined_call_operand.hbm [shape: bf16[384,128], index: 9, kind: input, shape index: {}]   ;;  %s2907_s10 = inlined_call_operand.vmem [shape: f32[1,128], index: 10, kind: input, shape index: {}]   ;;  %s2908_s11 = inlined_call_operand.hbm [shape: f32[8,128], index: 11, kind: output, shape index: {0}]   ;;  %s2909_s12 = inlined_call_operand.hbm [shape: f32[8,128], index: 12, kind: output, shape index: {1}]  }
   0x1   :  { %19 = vsyncpa [#allocation6], 0 }
   0x2   :  { %20 = vsyncpa [#allocation9], 0 }
   0x3   :  { %21 = vsyncpa [#allocation12], 0 }
   0x4   :  { %22 = vsyncpa [#allocation15], 0 }
   0x5   :  { %23 = vsyncpa [#allocation4], 0  ;;  %s41_s23 = sshll.u32 %s2898_s1, 4  ;;  %s42_s23 = int_to_ptr.hbm [resolvable:$true] %s41_s23 }
   0x6   :  { %24 = vsyncpa [#allocation19], 0  ;;  %s2620_s24 = smov [#allocation5]   ;;  %s64_s28 = sshll.u32 %s2900_s3, 4  ;;  %s65_s28 = int_to_ptr.hbm [resolvable:$true] %s64_s28 }
   0x7   :  { %s43_s25 = sshll.u32 %s2620_s24, 4  ;;  %s2621_s29 = smov [#allocation8]   ;;  %s44_s25 = int_to_ptr.vmem [resolvable:$true] %s43_s25 }
   0x8   :  { %46 = dma.hbm_to_vmem [thread:$0]  %s42_s23, 128, %s44_s25, [#allocation6]  }
   0x9   :  { %s66_s30 = sshll.u32 %s2621_s29, 4  ;;  %s91_s15 = sshll.u32 %s2902_s5, 4  ;;  %s67_s30 = int_to_ptr.vmem [resolvable:$true] %s66_s30  ;;  %s92_s15 = int_to_ptr.hbm [resolvable:$true] %s91_s15 }
   0xa   :  { %s2622_s1 = smov 64   ;;  %s2623_s16 = smov 4  }
   0xb   :  { %72 = dma.hbm_to_vmem [thread:$0]  %s65_s28, 1024, %s67_s30, [#allocation9], %s2622_s1, %s2622_s1, %s2623_s16  }
   0xc   :  { %s2624_s17 = smov [#allocation11]   ;;  %s114_s20 = sshll.u32 %s2904_s7, 4  ;;  %s115_s20 = int_to_ptr.hbm [resolvable:$true] %s114_s20 }
   0xd   :  { %s93_s18 = sshll.u32 %s2624_s17, 4  ;;  %s2625_s21 = smov [#allocation14]   ;;  %s94_s18 = int_to_ptr.vmem [resolvable:$true] %s93_s18 }
   0xe   :  { %96 = dma.hbm_to_vmem [thread:$0]  %s92_s15, 32, %s94_s18, [#allocation12]  }
   0xf   :  { %s116_s22 = sshll.u32 %s2625_s21, 4  ;;  %s30_s24 = sshll.u32 %s2897_s0, 4  ;;  %s117_s22 = int_to_ptr.vmem [resolvable:$true] %s116_s22  ;;  %s31_s24 = int_to_ptr.hbm [resolvable:$true] %s30_s24 }
  0x10   :  { %s2626_s25 = smov 192   ;;  %s2627_s26 = smov 12  }
  0x11   :  { %122 = dma.hbm_to_vmem [thread:$0]  %s115_s20, 3072, %s117_s22, [#allocation15], %s2626_s25, %s2626_s25, %s2627_s26  }
  0x12   :  { %s51_s29 = sshll.u32 %s2899_s2, 4  ;;  %s2628_s30 = smov [#allocation2]   ;;  %s52_s29 = int_to_ptr.hbm [resolvable:$true] %s51_s29 }
  0x13   :  { %s32_s13 = sshll.u32 %s2628_s30, 4  ;;  %s2629_s7 = smov [#allocation7]   ;;  %s33_s13 = int_to_ptr.vmem [resolvable:$true] %s32_s13 }
  0x14   :  { %35 = dma.hbm_to_vmem [thread:$0]  %s31_s24, 64, %s33_s13, [#allocation3]  }
  0x15   :  { %s53_s14 = sshll.u32 %s2629_s7, 4  ;;  %s77_s0 = sshll.u32 %s2901_s4, 4  ;;  %s54_s14 = int_to_ptr.vmem [resolvable:$true] %s53_s14  ;;  %s78_s0 = int_to_ptr.hbm [resolvable:$true] %s77_s0 }
  0x16   :  { %59 = dma.hbm_to_vmem [thread:$0]  %s52_s29, 512, %s54_s14, [#allocation6], %s2622_s1, %s2622_s1, %s2623_s16  }
  0x17   :  { %s101_s2 = sshll.u32 %s2903_s6, 4  ;;  %s2630_s3 = smov [#allocation10]   ;;  %s102_s2 = int_to_ptr.hbm [resolvable:$true] %s101_s2 }
  0x18   :  { %s79_s20 = sshll.u32 %s2630_s3, 4  ;;  %s2631_s21 = smov [#allocation13]   ;;  %s80_s20 = int_to_ptr.vmem [resolvable:$true] %s79_s20 }
  0x19   :  { %85 = dma.hbm_to_vmem [thread:$0]  %s78_s0, 1024, %s80_s20, [#allocation9], %s2622_s1, %s2622_s1, %s2623_s16  }
  0x1a   :  { %s103_s4 = sshll.u32 %s2631_s21, 4  ;;  %s129_s23 = sshll.u32 %s2906_s9, 4  ;;  %s104_s4 = int_to_ptr.vmem [resolvable:$true] %s103_s4  ;;  %s130_s23 = int_to_ptr.hbm [resolvable:$true] %s129_s23 }
  0x1b   :  { %109 = dma.hbm_to_vmem [thread:$0]  %s102_s2, 6144, %s104_s4, [#allocation12], %s2626_s25, %s2626_s25, %s2627_s26  }
  0x1c   :  { %s2632_s24 = smov [#allocation16]  }
  0x1d   :  { %s131_s27 = sshll.u32 %s2632_s24, 4  ;;  %s132_s27 = int_to_ptr.vmem [resolvable:$true] %s131_s27 }
  0x1e   :  { %137 = dma.hbm_to_vmem [thread:$0]  %s130_s23, 3072, %s132_s27, [#allocation15], %s2622_s1, %s2622_s1, %s2623_s16  }
  0x1f   :  { %2606 = dma.done.wait [#allocation3], 64  }
  0x20   :  { %2607 = vsyncadd [#allocation3], 4294967232 }
  0x21   :  { %2608 = dma.done.wait [#allocation6], 640  }
  0x22   :  { %2609 = vsyncadd [#allocation6], 4294966656 }
  0x23   :  { %2610 = dma.done.wait [#allocation9], 2048  }
  0x24   :  { %2611 = vsyncadd [#allocation9], 4294965248 }
  0x25   :  { %2612 = dma.done.wait [#allocation12], 6176  }
  0x26   :  { %2613 = vsyncadd [#allocation12], 4294961120 }
  0x27   :  { %2614 = dma.done.wait [#allocation15], 6144  }
  0x28   :  { %2615 = vsyncadd [#allocation15], 4294961152  ;;  %v2172_v0 = vld [vmem:[#allocation8 + $0x38] sm:$0xff]  ;;  %v2171_v2 = vld [vmem:[#allocation8 + $0x30] sm:$0xff]  ;;  %vm474_vm0 = vcmask 1041409   ;;  %vm476_vm1 = vcmask 1042434  }
  0x29   :  { %v2180_v1 = vld [vmem:[#allocation10 + $0x38] sm:$0xff]  ;;  %251 = vmatpush.bf16.msra.mxu0 %v2172_v0  ;;  %v2179_v3 = vld [vmem:[#allocation10 + $0x30] sm:$0xff]  ;;  %v2170_v4 = vld [vmem:[#allocation8 + $0x28] sm:$0xff]  ;;  %vm478_vm2 = vcmask 1043459   ;;  %vm480_vm3 = vcmask 1044484   ;;  %vm482_vm4 = vcmask 1045509  }
  0x2a   :  { %352 = vmatpush.bf16.msra.mxu1 %v2180_v1  ;;  %v2178_v5 = vld [vmem:[#allocation10 + $0x28] sm:$0xff]  ;;  %v2169_v6 = vld [vmem:[#allocation8 + $0x20] sm:$0xff]  ;;  %v2168_v8 = vld [vmem:[#allocation8 + $0x18] sm:$0xff]  ;;  %vm484_vm5 = vcmask 1046534   ;;  %vm486_vm6 = vcmask 1047559   ;;  %vm489_vm7 = vcmask 64512  }
  0x2b   :  { %v2177_v7 = vld [vmem:[#allocation10 + $0x20] sm:$0xff]  ;;  %v2176_v9 = vld [vmem:[#allocation10 + $0x18] sm:$0xff]  ;;  %v2167_v10 = vld [vmem:[#allocation8 + $0x10] sm:$0xff]  ;;  %s1676_s26 = sshll.u32 %s2909_s12, 4  ;;  %s2635_s30 = smov [#allocation17]   ;;  %s1677_s26 = int_to_ptr.hbm [resolvable:$true] %s1676_s26 }
  0x2c   :  { %v2175_v11 = vld [vmem:[#allocation10 + $0x10] sm:$0xff]  ;;  %v2166_v12 = vld [vmem:[#allocation8 + $0x8] sm:$0xff]  ;;  %v2165_v14 = vld [vmem:[#allocation8] sm:$0xff]  ;;  %s1663_s13 = sshll.u32 %s2635_s30, 4  ;;  %s1665_s15 = sshll.u32 %s2908_s11, 4  ;;  %s1664_s13 = int_to_ptr.vmem [resolvable:$true] %s1663_s13  ;;  %s1666_s15 = int_to_ptr.hbm [resolvable:$true] %s1665_s15 }
  0x2d   :  { %252 = vmatpush.bf16.msra.mxu0 %v2171_v2  ;;  %v2174_v13 = vld [vmem:[#allocation10 + $0x8] sm:$0xff]  ;;  %v2173_v15 = vld [vmem:[#allocation10] sm:$0xff]  ;;  %v177_v16 = vld [vmem:[#allocation5] sm:$0xff] }
  0x2e   :  { %353 = vmatpush.bf16.msra.mxu1 %v2179_v3  ;;  %v2740_v17 = vpack.c.bf16 %v177_v16, %v177_v16  ;;  %v2161_v18 = vld [vmem:[#allocation7] sm:$0xff]  ;;  %v2162_v19 = vld [vmem:[#allocation7 + $0x8] sm:$0xff]  ;;  %v2163_v20 = vld [vmem:[#allocation7 + $0x10] sm:$0xff] }
  0x2f   :  { %v2164_v21 = vld [vmem:[#allocation7 + $0x18] sm:$0xff]  ;;  %v381_v22 = vld [vmem:[#allocation11] sm:$0x3] }
  0x30   :  { %v2746_v26 = vperm.slane %v381_v22, 0  ;;  %v431_v35 = vperm.slane %v381_v22, 1  ;;  %v464_v22 = vlaneseq }
  0x31   :  { %253 = vmatpush.bf16.msra.mxu0 %v2170_v4 }
  0x32   :  { %354 = vmatpush.bf16.msra.mxu1 %v2178_v5 }
  0x35   :  { %254 = vmatpush.bf16.msra.mxu0 %v2169_v6 }
  0x36   :  { %355 = vmatpush.bf16.msra.mxu1 %v2177_v7 }
  0x39   :  { %255 = vmatpush.bf16.msra.mxu0 %v2168_v8 }
  0x3a   :  { %356 = vmatpush.bf16.msra.mxu1 %v2176_v9 }
  0x3d   :  { %256 = vmatpush.bf16.msra.mxu0 %v2167_v10 }
  0x3e   :  { %357 = vmatpush.bf16.msra.mxu1 %v2175_v11 }
  0x41   :  { %257 = vmatpush.bf16.msra.mxu0 %v2166_v12 }
  0x42   :  { %358 = vmatpush.bf16.msra.mxu1 %v2174_v13 }
  0x45   :  { %258 = vmatpush.bf16.msra.mxu0 %v2165_v14 }
  0x46   :  { %359 = vmatpush.bf16.msra.mxu1 %v2173_v15 }
  0x48   :  { %259 = vmatmul.bf16.vlgmr.msra.gmra.mxu0 %v2740_v17 }
  0x49   :  { %360 = vmatmul.bf16.vlgmr.msra.gmra.mxu1 %v2161_v18 }
  0x59   :  { %365 = vmatmul.bf16.gmra.mxu1 %v2162_v19 }
  0x69   :  { %370 = vmatmul.bf16.gmra.mxu1 %v2163_v20 }
  0x79   :  { %375 = vmatmul.bf16.gmra.mxu1 %v2164_v21 }
  0xc5   :  { %v2743_v23 = vpop.f32.mrf.mxu0 }
  0xc6   :  { %v361_v24 = vpop.f32.mrf.mxu1  ;;  %v390_v25 = vperm.slane %v2743_v23, 0  ;;  %v383_v27 = vrot.slane %v2743_v23, 1  ;;  %v384_v34 = vrot.slane %v2743_v23, 2  ;;  %v385_v42 = vrot.slane %v2743_v23, 3 }
  0xc7   :  { %v386_v49 = vrot.slane %v2743_v23, 4  ;;  %v387_v56 = vrot.slane %v2743_v23, 5  ;;  %v388_v1 = vrot.slane %v2743_v23, 6  ;;  %v389_v8 = vrot.slane %v2743_v23, 7 }
  0xc8   :  { %v406_v28 = vadd.f32 %v390_v25, %v361_v24  ;;  %v391_v30 = vperm.slane %v383_v27, 0  ;;  %v392_v38 = vperm.slane %v384_v34, 0  ;;  %v393_v45 = vperm.slane %v385_v42, 0 }
  0xc9   :  { %v394_v53 = vperm.slane %v386_v49, 0  ;;  %v395_v60 = vperm.slane %v387_v56, 0  ;;  %v396_v3 = vperm.slane %v388_v1, 0  ;;  %v397_v10 = vperm.slane %v389_v8, 0 }
  0xca   :  { %v415_v29 = vadd.f32 %v2746_v26, %v406_v28  ;;  %v2763_v24 = vand.u32 127, %v464_v22 }
  0xcc   :  { %2297 = vtanh.f32 %v415_v29 }
  0xcd   :  { %v262_v32 = vpop.f32.mrf.mxu0 }
  0xce   :  { %v363_v31 = vpop.f32.mrf.mxu1 }
  0xcf   :  { %v407_v33 = vadd.f32 %v391_v30, %v363_v31 }
  0xd1   :  { %v416_v36 = vadd.f32 %v2746_v26, %v407_v33 }
  0xd2   :  { %v2298_v37 = vpop.eup %2297 }
  0xd3   :  { %2299 = vtanh.f32 %v416_v36  ;;  %v432_v39 = vmul.f32 %v2298_v37, %v431_v35 }
  0xd5   :  { %440 = vadd.xlane.f32.xlu0 %v432_v39 }
  0xd6   :  { %v366_v40 = vpop.f32.mrf.mxu1 }
  0xd7   :  { %v408_v41 = vadd.f32 %v392_v38, %v366_v40 }
  0xd9   :  { %v2300_v43 = vpop.eup %2299  ;;  %v417_v44 = vadd.f32 %v2746_v26, %v408_v41 }
  0xda   :  { %v433_v46 = vmul.f32 %v2300_v43, %v431_v35 }
  0xdb   :  { %2301 = vtanh.f32 %v417_v44 }
  0xdd   :  { %442 = vadd.xlane.f32.xlu0 %v433_v46 }
  0xde   :  { %v368_v47 = vpop.f32.mrf.mxu1 }
  0xdf   :  { %v409_v48 = vadd.f32 %v393_v45, %v368_v47  ;;  %v2633_v45 = vmov 0  }
  0xe0   :  { %2295 = vset.pattern.permute.xlu2 %v2633_v45  ;;  %2294 = vset.pattern.permute.xlu1 %v2633_v45 }
  0xe1   :  { %v2302_v50 = vpop.eup %2301  ;;  %v418_v51 = vadd.f32 %v2746_v26, %v409_v48  ;;  %2293 = vset.pattern.permute.xlu0 %v2633_v45 }
  0xe2   :  { %v434_v52 = vmul.f32 %v2302_v50, %v431_v35 }
  0xe3   :  { %2303 = vtanh.f32 %v418_v51 }
  0xe4   :  { %444 = vadd.xlane.f32.xlu1 %v434_v52 }
  0xe6   :  { %v371_v54 = vpop.f32.mrf.mxu1 }
  0xe7   :  { %v410_v55 = vadd.f32 %v394_v53, %v371_v54 }
  0xe9   :  { %v2304_v57 = vpop.eup %2303  ;;  %v419_v58 = vadd.f32 %v2746_v26, %v410_v55 }
  0xea   :  { %v435_v59 = vmul.f32 %v2304_v57, %v431_v35 }
  0xeb   :  { %2305 = vtanh.f32 %v419_v58 }
  0xec   :  { %446 = vadd.xlane.f32.xlu1 %v435_v59 }
  0xee   :  { %v373_v61 = vpop.f32.mrf.mxu1 }
  0xef   :  { %v411_v62 = vadd.f32 %v395_v60, %v373_v61 }
  0xf1   :  { %v2306_v63 = vpop.eup %2305  ;;  %v420_v0 = vadd.f32 %v2746_v26, %v411_v62 }
  0xf2   :  { %v436_v2 = vmul.f32 %v2306_v63, %v431_v35 }
  0xf3   :  { %2307 = vtanh.f32 %v420_v0 }
  0xf4   :  { %448 = vadd.xlane.f32.xlu2 %v436_v2 }
  0xf6   :  { %v376_v4 = vpop.f32.mrf.mxu1 }
  0xf7   :  { %v412_v5 = vadd.f32 %v396_v3, %v376_v4 }
  0xf9   :  { %v2308_v6 = vpop.eup %2307  ;;  %v421_v7 = vadd.f32 %v2746_v26, %v412_v5 }
  0xfa   :  { %v437_v9 = vmul.f32 %v2308_v6, %v431_v35 }
  0xfb   :  { %2309 = vtanh.f32 %v421_v7 }
  0xfc   :  { %450 = vadd.xlane.f32.xlu2 %v437_v9 }
  0xfe   :  { %v378_v11 = vpop.f32.mrf.mxu1 }
  0xff   :  { %v413_v12 = vadd.f32 %v397_v10, %v378_v11 }
 0x101   :  { %v2310_v13 = vpop.eup %2309  ;;  %v422_v14 = vadd.f32 %v2746_v26, %v413_v12 }
 0x102   :  { %v438_v15 = vmul.f32 %v2310_v13, %v431_v35 }
 0x103   :  { %2311 = vtanh.f32 %v422_v14 }
 0x104   :  { %452 = vadd.xlane.f32.xlu0 %v438_v15 }
 0x109   :  { %v2312_v16 = vpop.eup %2311 }
 0x10a   :  { %v439_v18 = vmul.f32 %v2312_v16, %v431_v35 }
 0x10c   :  { %454 = vadd.xlane.f32.xlu1 %v439_v18 }
 0x148   :  { %v441_v19 = vpop.xlane.xlu0 %440 }
 0x149   :  { %v466_v29 = vperm.slane %v441_v19, %v2763_v24 }
 0x150   :  { %v443_v23 = vpop.xlane.xlu0 %442 }
 0x151   :  { %v467_v27 = vperm.slane %v443_v23, %v2763_v24 }
 0x153   :  { %v475_v33 = vsel %vm474_vm0, %v467_v27, %v466_v29 }
 0x157   :  { %v445_v20 = vpop.xlane.xlu1 %444 }
 0x158   :  { %v468_v28 = vperm.slane %v445_v20, %v2763_v24 }
 0x15a   :  { %v477_v35 = vsel %vm476_vm1, %v468_v28, %v475_v33 }
 0x15f   :  { %v447_v25 = vpop.xlane.xlu1 %446 }
 0x160   :  { %v469_v30 = vperm.slane %v447_v25, %v2763_v24 }
 0x162   :  { %v479_v37 = vsel %vm478_vm2, %v469_v30, %v477_v35 }
 0x167   :  { %v449_v21 = vpop.xlane.xlu2 %448 }
 0x168   :  { %v470_v32 = vperm.slane %v449_v21, %v2763_v24 }
 0x16a   :  { %v481_v38 = vsel %vm480_vm3, %v470_v32, %v479_v37 }
 0x16f   :  { %v451_v26 = vpop.xlane.xlu2 %450 }
 0x170   :  { %v471_v34 = vperm.slane %v451_v26, %v2763_v24 }
 0x172   :  { %v483_v41 = vsel %vm482_vm4, %v471_v34, %v481_v38 }
 0x177   :  { %v453_v31 = vpop.xlane.xlu0 %452 }
 0x178   :  { %v472_v36 = vperm.slane %v453_v31, %v2763_v24 }
 0x17a   :  { %v485_v42 = vsel %vm484_vm5, %v472_v36, %v483_v41 }
 0x17f   :  { %v455_v39 = vpop.xlane.xlu1 %454 }
 0x180   :  { %v473_v40 = vperm.slane %v455_v39, %v2763_v24 }
 0x182   :  { %v487_v43 = vsel %vm486_vm6, %v473_v40, %v485_v42  ;;  %v1861_v42 = vld [vmem:[#allocation13 + $0xa8] sm:$0xf] }
 0x183   :  { %v490_v44 = vsel %vm489_vm7, %v487_v43, -inf  ;;  %v2203_v43 = vld [vmem:[#allocation13 + $0xb0] sm:$0xf0] }
 0x184   :  { %491 = vmax.xlane.f32.xlu2 %v490_v44  ;;  %v1849_v44 = vld [vmem:[#allocation13 + $0x90] sm:$0xf]  ;;  %v1862_v45 = vor.u32 %v2203_v43, %v1861_v42 }
 0x186   :  { %1087 = vmatpush.bf16.msra.mxu2 %v1862_v45 }
 0x1f7   :  { %v492_v46 = vpop.xlane.xlu2 %491 }
 0x1f8   :  { %v496_v47 = vperm.slane %v492_v46, 2  ;;  %v495_v48 = vperm.slane %v492_v46, 1  ;;  %v494_v49 = vperm.slane %v492_v46, 0  ;;  %v497_v53 = vperm.slane %v492_v46, 3 }
 0x1f9   :  { %v498_v54 = vperm.slane %v492_v46, 4  ;;  %v501_v55 = vperm.slane %v492_v46, 7  ;;  %v499_v63 = vperm.slane %v492_v46, 5  ;;  %v500_v1 = vperm.slane %v492_v46, 6  ;;  %v2200_v46 = vld [vmem:[#allocation13 + $0x98] sm:$0xf0] }
 0x1fa   :  { %v512_v50 = vsub.f32 %v445_v20, %v496_v47  ;;  %v511_v51 = vsub.f32 %v443_v23, %v495_v48  ;;  %v510_v52 = vsub.f32 %v441_v19, %v494_v49  ;;  %v513_v59 = vsub.f32 %v447_v25, %v497_v53  ;;  %v1837_v48 = vld [vmem:[#allocation13 + $0x78] sm:$0xf] }
 0x1fb   :  { %v514_v60 = vsub.f32 %v449_v21, %v498_v54  ;;  %v517_v61 = vsub.f32 %v455_v39, %v501_v55  ;;  %v515_v6 = vsub.f32 %v451_v26, %v499_v63  ;;  %v516_v7 = vsub.f32 %v453_v31, %v500_v1  ;;  %v1863_v53 = vld [vmem:[#allocation13 + $0xb4] sm:$0xf0]  ;;  %v2053_v54 = vld [vmem:[#allocation14 + $0xa8] sm:$0xf]  ;;  %v2251_v55 = vld [vmem:[#allocation14 + $0xb0] sm:$0xf0] }
 0x1fc   :  { %v522_v56 = vmul.f32 1.442695, %v512_v50  ;;  %v520_v57 = vmul.f32 1.442695, %v511_v51  ;;  %v518_v58 = vmul.f32 1.442695, %v510_v52 }
 0x1fd   :  { %v524_v62 = vmul.f32 1.442695, %v513_v59  ;;  %v526_v0 = vmul.f32 1.442695, %v514_v60  ;;  %v532_v3 = vmul.f32 1.442695, %v517_v61 }
 0x1fe   :  { %2313 = vpow2.f32 %v522_v56  ;;  %v528_v8 = vmul.f32 1.442695, %v515_v6  ;;  %v530_v9 = vmul.f32 1.442695, %v516_v7  ;;  %v2197_v51 = vld [vmem:[#allocation13 + $0x80] sm:$0xf0]  ;;  %v2054_v7 = vor.u32 %v2251_v55, %v2053_v54 }
 0x1ff   :  { %2315 = vpow2.f32 %v520_v57  ;;  %v2202_v52 = vld [vmem:[#allocation13 + $0xac] sm:$0xf]  ;;  %v2227_v59 = vld [vmem:[#allocation13 + $0x170] sm:$0xf0]  ;;  %v1838_v61 = vor.u32 %v2197_v51, %v1837_v48  ;;  %v2041_v63 = vld [vmem:[#allocation14 + $0x90] sm:$0xf] }
 0x200   :  { %2317 = vpow2.f32 %v518_v58  ;;  %v1957_v58 = vld [vmem:[#allocation13 + $0x168] sm:$0xf]  ;;  %v2199_v60 = vld [vmem:[#allocation13 + $0x94] sm:$0xf]  ;;  %v1825_v1 = vld [vmem:[#allocation13 + $0x60] sm:$0xf]  ;;  %v1866_v6 = vor.u32 %v2202_v52, %v1863_v53  ;;  %1334 = vmatpush.bf16.msrb.mxu1 %v2054_v7 }
 0x201   :  { %2319 = vpow2.f32 %v524_v62  ;;  %v1851_v62 = vld [vmem:[#allocation13 + $0x9c] sm:$0xf0]  ;;  %v2193_v48 = vld [vmem:[#allocation13 + $0x64] sm:$0xf]  ;;  %v2182_v53 = vld [vmem:[#allocation13 + $0x8] sm:$0xf0] }
 0x202   :  { %2321 = vpow2.f32 %v526_v0  ;;  %v2248_v0 = vld [vmem:[#allocation14 + $0x98] sm:$0xf0]  ;;  %1113 = vmatpush.bf16.msrb.mxu0 %v1866_v6  ;;  %v1777_v52 = vld [vmem:[#allocation13] sm:$0xf]  ;;  %v2187_v6 = vld [vmem:[#allocation13 + $0x34] sm:$0xf] }
 0x203   :  { %2323 = vpow2.f32 %v532_v3  ;;  %v2194_v3 = vld [vmem:[#allocation13 + $0x68] sm:$0xf0]  ;;  %v1921_v54 = vld [vmem:[#allocation13 + $0x120] sm:$0xf]  ;;  %v1778_v55 = vor.u32 %v2182_v53, %v1777_v52  ;;  %v1953_v52 = vld [vmem:[#allocation13 + $0x158] sm:$0xf] }
 0x204   :  { %v2781_v2 = vpop.eup %2313  ;;  %2325 = vpow2.f32 %v528_v8  ;;  %v1945_v8 = vld [vmem:[#allocation13 + $0x150] sm:$0xf]  ;;  %v1803_v7 = vld [vmem:[#allocation13 + $0x3c] sm:$0xf0]  ;;  %v2225_v53 = vld [vmem:[#allocation13 + $0x160] sm:$0xf0] }
 0x205   :  { %v2783_v4 = vpop.eup %2315  ;;  %549 = vperm.xlu2 %2295, %v2781_v2   ;;  %2327 = vpow2.f32 %v530_v9 }
 0x206   :  { %v2786_v5 = vpop.eup %2317  ;;  %546 = vperm.xlu1 %2294, %v2783_v4  }
 0x207   :  { %543 = vperm.xlu0 %2293, %v2786_v5   ;;  %v2790_v10 = vpop.eup %2319 }
 0x208   :  { %v2792_v11 = vpop.eup %2321 }
 0x209   :  { %v2795_v12 = vpop.eup %2323 }
 0x20a   :  { %v2799_v13 = vpop.eup %2325 }
 0x20b   :  { %v2801_v14 = vpop.eup %2327 }
 0x20d   :  { %552 = vperm.xlu2 %2295, %v2790_v10  }
 0x20e   :  { %555 = vperm.xlu1 %2294, %v2792_v11  }
 0x20f   :  { %564 = vperm.xlu0 %2293, %v2795_v12  }
 0x215   :  { %558 = vperm.xlu2 %2295, %v2799_v13  }
 0x216   :  { %561 = vperm.xlu1 %2294, %v2801_v14  }
 0x25f   :  { %v550_v15 = vpop.permute.xlu2 %549 }
 0x260   :  { %v568_v25 = vperm.slane %v550_v15, %v2763_v24  ;;  %v2224_v15 = vld [vmem:[#allocation13 + $0x158] sm:$0xf0] }
 0x267   :  { %v553_v19 = vpop.permute.xlu2 %552 }
 0x268   :  { %v569_v26 = vperm.slane %v553_v19, %v2763_v24  ;;  %v2042_v19 = vor.u32 %v2248_v0, %v2041_v63  ;;  %v1909_v0 = vld [vmem:[#allocation13 + $0x108] sm:$0xf] }
 0x26a   :  { %1335 = vmatpush.bf16.msrb.mxu1 %v2042_v19  ;;  %v1897_v19 = vld [vmem:[#allocation13 + $0xf0] sm:$0xf] }
 0x26f   :  { %v559_v29 = vpop.permute.xlu2 %558 }
 0x270   :  { %v571_v33 = vperm.slane %v559_v29, %v2763_v24  ;;  %v2221_v29 = vld [vmem:[#allocation13 + $0x140] sm:$0xf0] }
 0x278   :  { %v547_v16 = vpop.permute.xlu1 %546 }
 0x279   :  { %v544_v18 = vpop.permute.xlu0 %543  ;;  %v567_v20 = vperm.slane %v547_v16, %v2763_v24  ;;  %v1813_v16 = vld [vmem:[#allocation13 + $0x48] sm:$0xf] }
 0x27a   :  { %v566_v21 = vperm.slane %v544_v18, %v2763_v24  ;;  %v1854_v18 = vor.u32 %v2199_v60, %v1851_v62  ;;  %v2005_v60 = vld [vmem:[#allocation14 + $0x48] sm:$0xf]  ;;  %v2239_v62 = vld [vmem:[#allocation14 + $0x50] sm:$0xf0] }
 0x27b   :  { %v2006_v63 = vor.u32 %v2239_v62, %v2005_v60  ;;  %v2201_v62 = vld [vmem:[#allocation13 + $0xa0] sm:$0xf0] }
 0x27c   :  { %v574_v22 = vsel %vm474_vm0, %v567_v20, %v566_v21  ;;  %v2196_v20 = vld [vmem:[#allocation13 + $0x7c] sm:$0xf]  ;;  %v1826_v21 = vor.u32 %v2194_v3, %v1825_v1  ;;  %1114 = vmatpush.bf16.msrb.mxu0 %v1854_v18  ;;  %v2215_v1 = vld [vmem:[#allocation13 + $0x110] sm:$0xf0] }
 0x27d   :  { %v575_v27 = vsel %vm476_vm1, %v568_v25, %v574_v22  ;;  %v1946_v22 = vor.u32 %v2224_v15, %v1945_v8  ;;  %v2029_v25 = vld [vmem:[#allocation14 + $0x78] sm:$0xf]  ;;  %v1910_v3 = vor.u32 %v2215_v1, %v1909_v0  ;;  %v1806_v8 = vor.u32 %v2187_v6, %v1803_v7  ;;  %v1993_v15 = vld [vmem:[#allocation14 + $0x30] sm:$0xf]  ;;  %v2266_v6 = vld [vmem:[#allocation16 + $0x68] sm:$0xff] }
 0x27e   :  { %v576_v30 = vsel %vm478_vm2, %v569_v26, %v575_v27  ;;  %v2245_v27 = vld [vmem:[#allocation14 + $0x80] sm:$0xf0]  ;;  %v1933_v26 = vld [vmem:[#allocation13 + $0x138] sm:$0xf]  ;;  %v2843_v0 = vld [vmem:[#allocation2] sm:$0xf] }
 0x27f   :  { %v2845_v7 = vld [vmem:[#allocation7 + $0xc] sm:$0xff]  }
 0x280   :  { %v556_v23 = vpop.permute.xlu1 %555 }
 0x281   :  { %v570_v28 = vperm.slane %v556_v23, %v2763_v24  ;;  %v565_v32 = vpop.permute.xlu0 %564  ;;  %v1839_v23 = vld [vmem:[#allocation13 + $0x84] sm:$0xf0] }
 0x282   :  { %v573_v36 = vperm.slane %v565_v32, %v2763_v24  ;;  %v1842_v32 = vor.u32 %v2196_v20, %v1839_v23  ;;  %v2212_v20 = vld [vmem:[#allocation13 + $0xf8] sm:$0xf0]  ;;  %v1791_v23 = vld [vmem:[#allocation13 + $0x24] sm:$0xf0] }
 0x283   :  { %v577_v31 = vsel %vm480_vm3, %v570_v28, %v576_v30  ;;  %v2191_v28 = vld [vmem:[#allocation13 + $0x50] sm:$0xf0] }
 0x284   :  { %v578_v37 = vsel %vm482_vm4, %v571_v33, %v577_v31  ;;  %v2030_v33 = vor.u32 %v2245_v27, %v2029_v25  ;;  %1115 = vmatpush.bf16.msrb.mxu0 %v1842_v32  ;;  %v2220_v25 = vld [vmem:[#allocation13 + $0x13c] sm:$0xf]  ;;  %v1885_v32 = vld [vmem:[#allocation13 + $0xd8] sm:$0xf] }
 0x286   :  { %1336 = vmatpush.bf16.msrb.mxu1 %v2030_v33  ;;  %v2209_v33 = vld [vmem:[#allocation13 + $0xe0] sm:$0xf0] }
 0x288   :  { %v562_v34 = vpop.permute.xlu1 %561 }
 0x289   :  { %v572_v35 = vperm.slane %v562_v34, %v2763_v24  ;;  %v1850_v24 = vor.u32 %v2200_v46, %v1849_v44  ;;  %v1814_v34 = vor.u32 %v2191_v28, %v1813_v16  ;;  %v2236_v16 = vld [vmem:[#allocation14 + $0x38] sm:$0xf0]  ;;  %v1935_v28 = vld [vmem:[#allocation13 + $0x144] sm:$0xf0] }
 0x28a   :  { %v1994_v18 = vor.u32 %v2236_v16, %v1993_v15  ;;  %v2208_v15 = vld [vmem:[#allocation13 + $0xdc] sm:$0xf]  ;;  %v1845_v16 = vld [vmem:[#allocation13 + $0x80] sm:$0xf] }
 0x28b   :  { %v579_v38 = vsel %vm484_vm5, %v572_v35, %v578_v37  ;;  %1088 = vmatpush.bf16.msra.mxu2 %v1850_v24  ;;  %v1934_v35 = vor.u32 %v2221_v29, %v1933_v26  ;;  %v2188_v37 = vld [vmem:[#allocation13 + $0x38] sm:$0xf0]  ;;  %v1981_v26 = vld [vmem:[#allocation14 + $0x18] sm:$0xf]  ;;  %v2233_v29 = vld [vmem:[#allocation14 + $0x20] sm:$0xf0] }
 0x28c   :  { %v580_v39 = vsel %vm486_vm6, %v573_v36, %v579_v38  ;;  %v1801_v36 = vld [vmem:[#allocation13 + $0x30] sm:$0xf] }
 0x28d   :  { %v582_v40 = vsel %vm489_vm7, %v580_v39, 0.0 }
 0x28e   :  { %583 = vadd.xlane.f32.xlu2 %v582_v40  ;;  %v2185_v40 = vld [vmem:[#allocation13 + $0x20] sm:$0xf0] }
 0x28f   :  { %1089 = vmatpush.bf16.msra.mxu2 %v1838_v61 }
 0x293   :  { %1090 = vmatpush.bf16.msra.mxu2 %v1826_v21  ;;  %v1898_v21 = vor.u32 %v2212_v20, %v1897_v19 }
 0x297   :  { %1091 = vmatpush.bf16.msra.mxu2 %v1814_v34  ;;  %v1886_v34 = vor.u32 %v2209_v33, %v1885_v32  ;;  %v1875_v32 = vld [vmem:[#allocation13 + $0xcc] sm:$0xf0]  ;;  %v1833_v33 = vld [vmem:[#allocation13 + $0x68] sm:$0xf] }
 0x301   :  { %v584_v41 = vpop.xlane.xlu2 %583 }
 0x302   :  { %2329 = vrcp.f32 %v584_v41 }
 0x308   :  { %v2821_v47 = vpop.eup %2329 }
 0x309   :  { %v588_v49 = vperm.slane %v2821_v47, 1  ;;  %v587_v50 = vperm.slane %v2821_v47, 0  ;;  %v590_v9 = vperm.slane %v2821_v47, 3  ;;  %v592_v38 = vperm.slane %v2821_v47, 5 }
 0x30a   :  { %v591_v39 = vperm.slane %v2821_v47, 4  ;;  %v594_v44 = vperm.slane %v2821_v47, 7  ;;  %v593_v45 = vperm.slane %v2821_v47, 6 }
 0x30b   :  { %v604_v56 = vmul.f32 %v2783_v4, %v588_v49  ;;  %v603_v57 = vmul.f32 %v2786_v5, %v587_v50  ;;  %v1958_v4 = vor.u32 %v2227_v59, %v1957_v58  ;;  %v589_v5 = vperm.slane %v2821_v47, 2  ;;  %v1827_v49 = vld [vmem:[#allocation13 + $0x6c] sm:$0xf0]  ;;  %v2017_v50 = vld [vmem:[#allocation14 + $0x60] sm:$0xf] }
 0x30c   :  { %v606_v30 = vmul.f32 %v2790_v10, %v590_v9  ;;  %v1789_v10 = vld [vmem:[#allocation13 + $0x18] sm:$0xf]  ;;  %v608_v41 = vmul.f32 %v2799_v13, %v592_v38  ;;  %v607_v42 = vmul.f32 %v2792_v11, %v591_v39  ;;  %v610_v46 = vmul.f32 %v2795_v12, %v594_v44  ;;  %v2242_v11 = vld [vmem:[#allocation14 + $0x68] sm:$0xf0]  ;;  %v2223_v9 = vld [vmem:[#allocation13 + $0x154] sm:$0xf] }
 0x30d   :  { %626 = vperm.xlu0 %2293, %v604_v56   ;;  %621 = vperm.xlu1 %2294, %v603_v57   ;;  %v605_v31 = vmul.f32 %v2781_v2, %v589_v5  ;;  %v1802_v2 = vor.u32 %v2188_v37, %v1801_v36  ;;  %v1790_v43 = vor.u32 %v2185_v40, %v1789_v10  ;;  %v2218_v47 = vld [vmem:[#allocation13 + $0x128] sm:$0xf0]  ;;  %v1815_v57 = vld [vmem:[#allocation13 + $0x54] sm:$0xf0]  ;;  %v1779_v36 = vld [vmem:[#allocation13 + $0xc] sm:$0xf0] }
 0x30e   :  { %1100 = vmatpush.bf16.msra.mxu3 %v1958_v4  ;;  %v609_v24 = vmul.f32 %v2801_v14, %v593_v45  ;;  %v1830_v13 = vor.u32 %v2193_v48, %v1827_v49  ;;  %v2018_v51 = vor.u32 %v2242_v11, %v2017_v50  ;;  %v2190_v56 = vld [vmem:[#allocation13 + $0x4c] sm:$0xf]  ;;  %v1922_v12 = vor.u32 %v2218_v47, %v1921_v54  ;;  %v1959_v59 = vld [vmem:[#allocation13 + $0x174] sm:$0xf0]  ;;  %v1947_v4 = vld [vmem:[#allocation13 + $0x15c] sm:$0xf0] }
 0x30f   :  { %1092 = vmatpush.bf16.msra.mxu2 %v1802_v2  ;;  %v1818_v58 = vor.u32 %v2190_v56, %v1815_v57  ;;  %v2226_v14 = vld [vmem:[#allocation13 + $0x16c] sm:$0xf]  ;;  %v1950_v5 = vor.u32 %v2223_v9, %v1947_v4  ;;  %v2217_v38 = vld [vmem:[#allocation13 + $0x124] sm:$0xf]  ;;  %v1923_v39 = vld [vmem:[#allocation13 + $0x12c] sm:$0xf0]  ;;  %v1954_v56 = vor.u32 %v2225_v53, %v1953_v52 }
 0x310   :  { %1116 = vmatpush.bf16.msrb.mxu0 %v1830_v13  ;;  %1337 = vmatpush.bf16.msrb.mxu1 %v2018_v51  ;;  %v1962_v61 = vor.u32 %v2226_v14, %v1959_v59  ;;  %v1969_v2 = vld [vmem:[#allocation14] sm:$0xf]  ;;  %v1926_v10 = vor.u32 %v2217_v38, %v1923_v39  ;;  %v2230_v40 = vld [vmem:[#allocation14 + $0x8] sm:$0xf0]  ;;  %v2268_v45 = vld [vmem:[#allocation16 + $0x78] sm:$0xff] }
 0x311   :  { %v2214_v49 = vld [vmem:[#allocation13 + $0x10c] sm:$0xf]  ;;  %v1911_v13 = vld [vmem:[#allocation13 + $0x114] sm:$0xf0]  ;;  %v1869_v50 = vld [vmem:[#allocation13 + $0xb0] sm:$0xf] }
 0x312   :  { %1101 = vmatpush.bf16.msra.mxu3 %v1946_v22  ;;  %v2184_v22 = vld [vmem:[#allocation13 + $0x1c] sm:$0xf]  ;;  %v1914_v11 = vor.u32 %v2214_v49, %v1911_v13  ;;  %v2839_v54 = vld [vmem:[#allocation7 + $0x4] sm:$0xff]   ;;  %v2267_v57 = vld [vmem:[#allocation16 + $0x70] sm:$0xff] }
 0x313   :  { %1093 = vmatpush.bf16.msra.mxu2 %v1790_v43  ;;  %v1794_v27 = vor.u32 %v2184_v22, %v1791_v23  ;;  %v1970_v43 = vor.u32 %v2230_v40, %v1969_v2  ;;  %v2204_v51 = vld [vmem:[#allocation13 + $0xb8] sm:$0xf0]  ;;  %v612_v14 = vunpack.c.l.bf16 %v2839_v54  ;;  %v1929_v22 = vld [vmem:[#allocation13 + $0x128] sm:$0xf]  ;;  %v2219_v23 = vld [vmem:[#allocation13 + $0x130] sm:$0xf0] }
 0x314   :  { %1117 = vmatpush.bf16.msrb.mxu0 %v1818_v58  ;;  %1338 = vmatpush.bf16.msrb.mxu1 %v2006_v63  ;;  %v1870_v47 = vor.u32 %v2204_v51, %v1869_v50  ;;  %v1899_v58 = vld [vmem:[#allocation13 + $0xfc] sm:$0xf0]  ;;  %v2195_v38 = vld [vmem:[#allocation13 + $0x70] sm:$0xf0]  ;;  %v1917_v39 = vld [vmem:[#allocation13 + $0x110] sm:$0xf] }
 0x315   :  { %636 = vperm.xlu0 %2293, %v606_v30   ;;  %631 = vperm.xlu1 %2294, %v605_v31   ;;  %v1938_v30 = vor.u32 %v2220_v25, %v1935_v28  ;;  %v1982_v31 = vor.u32 %v2233_v29, %v1981_v26  ;;  %v1941_v63 = vld [vmem:[#allocation13 + $0x140] sm:$0xf]  ;;  %v2216_v2 = vld [vmem:[#allocation13 + $0x118] sm:$0xf0]  ;;  %v1821_v49 = vld [vmem:[#allocation13 + $0x50] sm:$0xf] }
 0x316   :  { %1102 = vmatpush.bf16.msra.mxu3 %v1934_v35  ;;  %v2181_v35 = vld [vmem:[#allocation13 + $0x4] sm:$0xf]  ;;  %v1918_v40 = vor.u32 %v2216_v2, %v1917_v39  ;;  %v2192_v13 = vld [vmem:[#allocation13 + $0x58] sm:$0xf0]  ;;  %v1905_v53 = vld [vmem:[#allocation13 + $0xf8] sm:$0xf] }
 0x317   :  { %1094 = vmatpush.bf16.msra.mxu2 %v1778_v55  ;;  %v1782_v37 = vor.u32 %v2181_v35, %v1779_v36  ;;  %v179_v55 = vld [vmem:[#allocation7] sm:$0xf]  ;;  %v613_v36 = vunpack.c.h.bf16 %v2839_v54  ;;  %v2213_v54 = vld [vmem:[#allocation13 + $0x100] sm:$0xf0] }
 0x318   :  { %1118 = vmatpush.bf16.msrb.mxu0 %v1806_v8  ;;  %1339 = vmatpush.bf16.msrb.mxu1 %v1994_v18  ;;  %v611_v59 = vunpack.c.l.bf16 %v179_v55  ;;  %v2265_v28 = vld [vmem:[#allocation16 + $0x60] sm:$0xff]  ;;  %v2247_v55 = vld [vmem:[#allocation14 + $0x94] sm:$0xf] }
 0x31a   :  { %1103 = vmatpush.bf16.msra.mxu3 %v1922_v12  ;;  %v2211_v12 = vld [vmem:[#allocation13 + $0xf4] sm:$0xf]  ;;  %1095 = vmatmul.bf16.vlgmr.msra.gmra.mxu2 %v2843_v0 }
 0x31b   :  { %1126 = vmatpush.bf16.msrb.mxu2 %v1962_v61  ;;  %v1902_v60 = vor.u32 %v2211_v12, %v1899_v58  ;;  %v1857_v61 = vld [vmem:[#allocation13 + $0x98] sm:$0xf]  ;;  %v2043_v12 = vld [vmem:[#allocation14 + $0x9c] sm:$0xf0]  ;;  %v2263_v58 = vld [vmem:[#allocation16 + $0x50] sm:$0xff] }
 0x31c   :  { %1119 = vmatpush.bf16.msrb.mxu0 %v1794_v27  ;;  %1340 = vmatpush.bf16.msrb.mxu1 %v1982_v31  ;;  %v1858_v1 = vor.u32 %v2201_v62, %v1857_v61  ;;  %v1930_v27 = vor.u32 %v2219_v23, %v1929_v22  ;;  %v2205_v31 = vld [vmem:[#allocation13 + $0xc4] sm:$0xf]  ;;  %v1809_v61 = vld [vmem:[#allocation13 + $0x38] sm:$0xf]  ;;  %v2046_v62 = vor.u32 %v2247_v55, %v2043_v12  ;;  %v1797_v22 = vld [vmem:[#allocation13 + $0x20] sm:$0xf] }
 0x31d   :  { %646 = vperm.xlu0 %2293, %v608_v41   ;;  %641 = vperm.xlu1 %2294, %v607_v42   ;;  %v1965_v41 = vld [vmem:[#allocation13 + $0x170] sm:$0xf]  ;;  %v2228_v42 = vld [vmem:[#allocation13 + $0x178] sm:$0xf0]  ;;  %v2186_v23 = vld [vmem:[#allocation13 + $0x28] sm:$0xf0] }
 0x31e   :  { %1104 = vmatpush.bf16.msra.mxu3 %v1910_v3  ;;  %v1966_v44 = vor.u32 %v2228_v42, %v1965_v41  ;;  %v2222_v3 = vld [vmem:[#allocation13 + $0x148] sm:$0xf0]  ;;  %v2055_v42 = vld [vmem:[#allocation14 + $0xb4] sm:$0xf0] }
 0x31f   :  { %1127 = vmatpush.bf16.msrb.mxu2 %v1950_v5  ;;  %v1942_v8 = vor.u32 %v2222_v3, %v1941_v63  ;;  %v1887_v5 = vld [vmem:[#allocation13 + $0xe4] sm:$0xf0]  ;;  %v2250_v41 = vld [vmem:[#allocation14 + $0xac] sm:$0xf]  ;;  %v2189_v63 = vld [vmem:[#allocation13 + $0x40] sm:$0xf0] }
 0x320   :  { %1120 = vmatpush.bf16.msrb.mxu0 %v1782_v37  ;;  %1341 = vmatpush.bf16.msrb.mxu1 %v1970_v43  ;;  %v1890_v20 = vor.u32 %v2208_v15, %v1887_v5  ;;  %v1878_v37 = vor.u32 %v2205_v31, %v1875_v32  ;;  %v2264_v43 = vld [vmem:[#allocation16 + $0x58] sm:$0xff]  ;;  %v2210_v3 = vld [vmem:[#allocation13 + $0xe8] sm:$0xf0]  ;;  %v2031_v5 = vld [vmem:[#allocation14 + $0x84] sm:$0xf0]  ;;  %v1798_v32 = vor.u32 %v2186_v23, %v1797_v22 }
 0x321   :  { %v2244_v15 = vld [vmem:[#allocation14 + $0x7c] sm:$0xf] }
 0x322   :  { %1105 = vmatpush.bf16.msra.mxu3 %v1898_v21  ;;  %v2198_v21 = vld [vmem:[#allocation13 + $0x88] sm:$0xf0] }
 0x323   :  { %1128 = vmatpush.bf16.msrb.mxu2 %v1938_v30  ;;  %1342 = vmatmul.bf16.vlgmr.msrb.gmra.mxu1 %v2740_v17  ;;  %v1846_v25 = vor.u32 %v2198_v21, %v1845_v16  ;;  %v614_v30 = vunpack.c.l.bf16 %v2845_v7  ;;  %v2262_v16 = vld [vmem:[#allocation16 + $0x48] sm:$0xff]  ;;  %v2034_v21 = vor.u32 %v2244_v15, %v2031_v5 }
 0x324   :  { %1152 = vmatpush.bf16.msra.mxu0 %v1966_v44  ;;  %1630 = vmatpush.bf16.msra.mxu1 %v2268_v45  ;;  %v1983_v15 = vld [vmem:[#allocation14 + $0x24] sm:$0xf0] }
 0x325   :  { %656 = vperm.xlu0 %2293, %v610_v46   ;;  %651 = vperm.xlu1 %2294, %v609_v24   ;;  %v1873_v46 = vld [vmem:[#allocation13 + $0xc0] sm:$0xf]  ;;  %v2206_v24 = vld [vmem:[#allocation13 + $0xc8] sm:$0xf0] }
 0x326   :  { %1106 = vmatpush.bf16.msra.mxu3 %v1886_v34  ;;  %v1874_v48 = vor.u32 %v2206_v24, %v1873_v46  ;;  %1121 = vmatmul.bf16.vlgmr.msrb.gmra.mxu0 %v2843_v0  ;;  %v2058_v46 = vor.u32 %v2250_v41, %v2055_v42  ;;  %v2261_v41 = vld [vmem:[#allocation16 + $0x40] sm:$0xff] }
 0x327   :  { %1129 = vmatpush.bf16.msrb.mxu2 %v1926_v10  ;;  %v1834_v10 = vor.u32 %v2195_v38, %v1833_v33  ;;  %v2019_v33 = vld [vmem:[#allocation14 + $0x6c] sm:$0xf0]  ;;  %v2183_v38 = vld [vmem:[#allocation13 + $0x10] sm:$0xf0] }
 0x328   :  { %1153 = vmatpush.bf16.msra.mxu0 %v1954_v56  ;;  %1631 = vmatpush.bf16.msra.mxu1 %v2267_v57  ;;  %v1822_v56 = vor.u32 %v2192_v13, %v1821_v49  ;;  %v1906_v57 = vor.u32 %v2213_v54, %v1905_v53 }
 0x32a   :  { %1107 = vmatpush.bf16.msra.mxu3 %v1874_v48 }
 0x32b   :  { %1130 = vmatpush.bf16.msrb.mxu2 %v1914_v11 }
 0x32c   :  { %1154 = vmatpush.bf16.msra.mxu0 %v1942_v8  ;;  %1632 = vmatpush.bf16.msra.mxu1 %v2266_v6 }
 0x32e   :  { %1139 = vmatpush.bf16.msrb.mxu3 %v1870_v47  ;;  %v2853_v47 = vld [vmem:[#allocation7 + $0x14] sm:$0xff]  }
 0x32f   :  { %1131 = vmatpush.bf16.msrb.mxu2 %v1902_v60 }
 0x330   :  { %1155 = vmatpush.bf16.msra.mxu0 %v1930_v27  ;;  %1633 = vmatpush.bf16.msra.mxu1 %v2265_v28 }
 0x332   :  { %1140 = vmatpush.bf16.msrb.mxu3 %v1858_v1  ;;  %v1893_v1 = vld [vmem:[#allocation13 + $0xe0] sm:$0xf] }
 0x333   :  { %1132 = vmatpush.bf16.msrb.mxu2 %v1890_v20  ;;  %v1894_v20 = vor.u32 %v2210_v3, %v1893_v1 }
 0x334   :  { %1156 = vmatpush.bf16.msra.mxu0 %v1918_v40  ;;  %1634 = vmatpush.bf16.msra.mxu1 %v2264_v43 }
 0x336   :  { %1141 = vmatpush.bf16.msrb.mxu3 %v1846_v25  ;;  %v1881_v25 = vld [vmem:[#allocation13 + $0xc8] sm:$0xf] }
 0x337   :  { %1133 = vmatpush.bf16.msrb.mxu2 %v1878_v37  ;;  %v1785_v37 = vld [vmem:[#allocation13 + $0x8] sm:$0xf] }
 0x338   :  { %1157 = vmatpush.bf16.msra.mxu0 %v1906_v57  ;;  %1635 = vmatpush.bf16.msra.mxu1 %v2263_v58  ;;  %v1786_v49 = vor.u32 %v2183_v38, %v1785_v37 }
 0x33a   :  { %1142 = vmatpush.bf16.msrb.mxu3 %v1834_v10  ;;  %v186_v10 = vld [vmem:[#allocation7 + $0x1c] sm:$0xf] }
 0x33b   :  { %1347 = vmatpush.bf16.msra.mxu2 %v2058_v46 }
 0x33c   :  { %1158 = vmatpush.bf16.msra.mxu0 %v1894_v20  ;;  %1636 = vmatpush.bf16.msra.mxu1 %v2262_v16 }
 0x33e   :  { %1143 = vmatpush.bf16.msrb.mxu3 %v1822_v56  ;;  %v1995_v56 = vld [vmem:[#allocation14 + $0x3c] sm:$0xf0] }
 0x33f   :  { %1348 = vmatpush.bf16.msra.mxu2 %v2046_v62 }
 0x340   :  { %1637 = vmatpush.bf16.msra.mxu1 %v2261_v41 }
 0x343   :  { %1349 = vmatpush.bf16.msra.mxu2 %v2034_v21 }
 0x37f   :  { %v627_v9 = vpop.permute.xlu0 %626  ;;  %v622_v4 = vpop.permute.xlu1 %621 }
 0x380   :  { %v660_v18 = vmul.f32 %v627_v9, %v612_v14  ;;  %v659_v19 = vmul.f32 %v622_v4, %v611_v59  ;;  %v616_v4 = vunpack.c.l.bf16 %v2853_v47 }
 0x382   :  { %v673_v26 = vrot.slane %v660_v18, 4  ;;  %v667_v29 = vrot.slane %v659_v19, 4 }
 0x384   :  { %v674_v34 = vadd.f32 %v673_v26, %v660_v18  ;;  %v668_v35 = vadd.f32 %v667_v29, %v659_v19  ;;  %v615_v18 = vunpack.c.h.bf16 %v2845_v7  ;;  %v1810_v19 = vor.u32 %v2189_v63, %v1809_v61  ;;  %v2207_v26 = vld [vmem:[#allocation13 + $0xd0] sm:$0xf0]  ;;  %v2241_v29 = vld [vmem:[#allocation14 + $0x64] sm:$0xf] }
 0x385   :  { %v2022_v40 = vor.u32 %v2241_v29, %v2019_v33 }
 0x386   :  { %v675_v44 = vrot.slane %v674_v34, 2  ;;  %v669_v45 = vrot.slane %v668_v35, 2  ;;  %1144 = vmatpush.bf16.msrb.mxu3 %v1810_v19 }
 0x387   :  { %v637_v24 = vpop.permute.xlu0 %636  ;;  %v632_v48 = vpop.permute.xlu1 %631  ;;  %1350 = vmatpush.bf16.msra.mxu2 %v2022_v40 }
 0x388   :  { %v676_v50 = vadd.f32 %v675_v44, %v674_v34  ;;  %v2851_v11 = vadd.f32 %v669_v45, %v668_v35  ;;  %v662_v51 = vmul.f32 %v637_v24, %v614_v30  ;;  %v661_v52 = vmul.f32 %v632_v48, %v613_v36  ;;  %v2238_v44 = vld [vmem:[#allocation14 + $0x4c] sm:$0xf]  ;;  %v2007_v45 = vld [vmem:[#allocation14 + $0x54] sm:$0xf0] }
 0x389   :  { %v1882_v36 = vor.u32 %v2207_v26, %v1881_v25  ;;  %v2010_v55 = vor.u32 %v2238_v44, %v2007_v45 }
 0x38a   :  { %v677_v14 = vrot.slane %v676_v50, 1  ;;  %v685_v59 = vrot.slane %v662_v51, 4  ;;  %v679_v60 = vrot.slane %v661_v52, 4  ;;  %v671_v6 = vrot.slane %v2851_v11, 1  ;;  %1145 = vmatpush.bf16.msrb.mxu3 %v1798_v32 }
 0x38b   :  { %1159 = vmatpush.bf16.msra.mxu0 %v1882_v36  ;;  %1351 = vmatpush.bf16.msra.mxu2 %v2010_v55 }
 0x38c   :  { %v686_v8 = vadd.f32 %v685_v59, %v662_v51  ;;  %v680_v9 = vadd.f32 %v679_v60, %v661_v52  ;;  %v678_v34 = vadd.f32 %v677_v14, %v676_v50  ;;  %v672_v42 = vadd.f32 %v671_v6, %v2851_v11  ;;  %v2235_v11 = vld [vmem:[#allocation14 + $0x34] sm:$0xf] }
 0x38d   :  { %v618_v51 = vunpack.c.l.bf16 %v186_v10  ;;  %v617_v52 = vunpack.c.h.bf16 %v2853_v47  ;;  %v1998_v6 = vor.u32 %v2235_v11, %v1995_v56  ;;  %v2061_v11 = vld [vmem:[#allocation14 + $0xb0] sm:$0xf]  ;;  %v2252_v56 = vld [vmem:[#allocation14 + $0xb8] sm:$0xf0] }
 0x38e   :  { %v687_v27 = vrot.slane %v686_v8, 2  ;;  %v681_v28 = vrot.slane %v680_v9, 2  ;;  %v717_v13 = vpack.c.bf16 %v678_v34, %v678_v34  ;;  %v716_v57 = vpack.c.bf16 %v672_v42, %v672_v42  ;;  %1146 = vmatpush.bf16.msrb.mxu3 %v1786_v49 }
 0x38f   :  { %v647_v30 = vpop.permute.xlu0 %646  ;;  %v642_v31 = vpop.permute.xlu1 %641  ;;  %1352 = vmatpush.bf16.msra.mxu2 %v1998_v6 }
 0x390   :  { %v688_v35 = vadd.f32 %v687_v27, %v686_v8  ;;  %v682_v7 = vadd.f32 %v681_v28, %v680_v9  ;;  %v664_v39 = vmul.f32 %v647_v30, %v616_v4  ;;  %v663_v2 = vmul.f32 %v642_v31, %v615_v18  ;;  %v2232_v4 = vld [vmem:[#allocation14 + $0x1c] sm:$0xf]  ;;  %v2229_v30 = vld [vmem:[#allocation14 + $0x4] sm:$0xf]  ;;  %v1971_v31 = vld [vmem:[#allocation14 + $0xc] sm:$0xf0] }
 0x391   :  { %v733_v1 = vperm.slane %v717_v13, 0  ;;  %v732_v5 = vperm.slane %v716_v57, 0  ;;  %v1986_v27 = vor.u32 %v2232_v4, %v1983_v15  ;;  %v2001_v15 = vld [vmem:[#allocation14 + $0x38] sm:$0xf] }
 0x392   :  { %v683_v43 = vrot.slane %v682_v7, 1  ;;  %v689_v46 = vrot.slane %v688_v35, 1  ;;  %v697_v24 = vrot.slane %v664_v39, 4  ;;  %v691_v48 = vrot.slane %v663_v2, 4 }
 0x393   :  { %v741_v28 = vunpack.c.l.b16 %v733_v1  ;;  %v740_v32 = vunpack.c.l.b16 %v732_v5  ;;  %1353 = vmatpush.bf16.msra.mxu2 %v1986_v27  ;;  %v2237_v5 = vld [vmem:[#allocation14 + $0x40] sm:$0xf0] }
 0x394   :  { %v684_v50 = vadd.f32 %v683_v43, %v682_v7  ;;  %v698_v53 = vadd.f32 %v697_v24, %v664_v39  ;;  %v692_v54 = vadd.f32 %v691_v48, %v663_v2  ;;  %v690_v12 = vadd.f32 %v689_v46, %v688_v35 }
 0x395   :  { %v1974_v39 = vor.u32 %v2229_v30, %v1971_v31  ;;  %v748_v40 = vsel %vm474_vm0, %v741_v28, %v740_v32  ;;  %v2276_v31 = vld [vmem:[#allocation16 + $0xb8] sm:$0xff]  ;;  %v2873_v32 = vld [vmem:[%s2905_s8] sm:$0x3f]  ;;  %s2634_s8 = smov [#allocation18]  }
 0x396   :  { %v699_v58 = vrot.slane %v698_v53, 2  ;;  %v693_v14 = vrot.slane %v692_v54, 2  ;;  %v718_v61 = vpack.c.bf16 %v684_v50, %v684_v50  ;;  %v719_v16 = vpack.c.bf16 %v690_v12, %v690_v12  ;;  %s1674_s1 = sshll.u32 %s2634_s8, 4  ;;  %s1675_s1 = int_to_ptr.vmem [resolvable:$true] %s1674_s1 }
 0x397   :  { %v657_v59 = vpop.permute.xlu0 %656  ;;  %v652_v60 = vpop.permute.xlu1 %651  ;;  %1354 = vmatpush.bf16.msra.mxu2 %v1974_v39  ;;  %v2273_v39 = vld [vmem:[#allocation16 + $0xa0] sm:$0xff] }
 0x398   :  { %v666_v62 = vmul.f32 %v657_v59, %v618_v51  ;;  %v665_v63 = vmul.f32 %v652_v60, %v617_v52  ;;  %v700_v47 = vadd.f32 %v699_v58, %v698_v53  ;;  %v694_v3 = vadd.f32 %v693_v14, %v692_v54  ;;  %v2049_v59 = vld [vmem:[#allocation14 + $0x98] sm:$0xf]  ;;  %v2249_v60 = vld [vmem:[#allocation14 + $0xa0] sm:$0xf0] }
 0x399   :  { %v734_v20 = vperm.slane %v718_v61, 0  ;;  %v735_v33 = vperm.slane %v719_v16, 0  ;;  %v2062_v14 = vor.u32 %v2252_v56, %v2061_v11  ;;  %v2050_v61 = vor.u32 %v2249_v60, %v2049_v59  ;;  %v2257_v56 = vld [vmem:[#allocation16 + $0x20] sm:$0xff] }
 0x39a   :  { %v709_v8 = vrot.slane %v666_v62, 4  ;;  %v703_v9 = vrot.slane %v665_v63, 4  ;;  %v701_v18 = vrot.slane %v700_v47, 1  ;;  %v695_v19 = vrot.slane %v694_v3, 1 }
 0x39b   :  { %v742_v7 = vunpack.c.l.b16 %v734_v20  ;;  %v743_v41 = vunpack.c.l.b16 %v735_v33  ;;  %v2002_v16 = vor.u32 %v2237_v5, %v2001_v15  ;;  %v2275_v33 = vld [vmem:[#allocation16 + $0xb0] sm:$0xff]  ;;  %v1198_v11 = vperm.slane %v2873_v32, 3 }
 0x39c   :  { %v710_v21 = vadd.f32 %v709_v8, %v666_v62  ;;  %v704_v22 = vadd.f32 %v703_v9, %v665_v63  ;;  %v702_v23 = vadd.f32 %v701_v18, %v700_v47  ;;  %v696_v25 = vadd.f32 %v695_v19, %v694_v3  ;;  %v2037_v62 = vld [vmem:[#allocation14 + $0x80] sm:$0xf]  ;;  %v2246_v63 = vld [vmem:[#allocation14 + $0x88] sm:$0xf0]  ;;  %v2025_v47 = vld [vmem:[#allocation14 + $0x68] sm:$0xf] }
 0x39d   :  { %v749_v43 = vsel %vm476_vm1, %v742_v7, %v748_v40  ;;  %v2038_v1 = vor.u32 %v2246_v63, %v2037_v62  ;;  %v2243_v3 = vld [vmem:[#allocation14 + $0x70] sm:$0xf0]  ;;  %v2013_v8 = vld [vmem:[#allocation14 + $0x50] sm:$0xf]  ;;  %v2240_v9 = vld [vmem:[#allocation14 + $0x58] sm:$0xf0]  ;;  %v1096_v28 = vpop.f32.mrf.mxu2 }
 0x39e   :  { %v711_v26 = vrot.slane %v710_v21, 2  ;;  %v705_v29 = vrot.slane %v704_v22, 2  ;;  %v721_v34 = vpack.c.bf16 %v702_v23, %v702_v23  ;;  %v720_v35 = vpack.c.bf16 %v696_v25, %v696_v25  ;;  %v1989_v18 = vld [vmem:[#allocation14 + $0x20] sm:$0xf]  ;;  %v2234_v19 = vld [vmem:[#allocation14 + $0x28] sm:$0xf0] }
 0x39f   :  { %v750_v13 = vsel %vm478_vm2, %v743_v41, %v749_v43  ;;  %v2026_v6 = vor.u32 %v2243_v3, %v2025_v47  ;;  %v2014_v4 = vor.u32 %v2240_v9, %v2013_v8  ;;  %v1990_v20 = vor.u32 %v2234_v19, %v1989_v18  ;;  %v2272_v43 = vld [vmem:[#allocation16 + $0x98] sm:$0xff]  ;;  %v2255_v63 = vld [vmem:[#allocation16 + $0x10] sm:$0xff] }
 0x3a0   :  { %v712_v36 = vadd.f32 %v711_v26, %v710_v21  ;;  %v706_v37 = vadd.f32 %v705_v29, %v704_v22  ;;  %v736_v38 = vperm.slane %v720_v35, 0  ;;  %v737_v42 = vperm.slane %v721_v34, 0  ;;  %v1977_v21 = vld [vmem:[#allocation14 + $0x8] sm:$0xf]  ;;  %v2231_v22 = vld [vmem:[#allocation14 + $0x10] sm:$0xf0]  ;;  %v1343_v25 = vpop.f32.mrf.mxu1 }
 0x3a1   :  { %v1978_v23 = vor.u32 %v2231_v22, %v1977_v21  ;;  %v822_v34 = vperm.slane %v2873_v32, 0  ;;  %v1197_v35 = vperm.slane %v2873_v32, 1  ;;  %v1204_v59 = vperm.slane %v1198_v11, 1 }
 0x3a2   :  { %v713_v2 = vrot.slane %v712_v36, 1  ;;  %v707_v10 = vrot.slane %v706_v37, 1  ;;  %v744_v44 = vunpack.c.l.b16 %v736_v38  ;;  %v745_v49 = vunpack.c.l.b16 %v737_v42 }
 0x3a3   :  { %v1122_v27 = vpop.f32.mrf.mxu0  ;;  %v828_v7 = vperm.slane %v822_v34, 0  ;;  %v824_v18 = vperm.slane %v2873_v32, 4 }
 0x3a4   :  { %v714_v45 = vadd.f32 %v713_v2, %v712_v36  ;;  %v708_v46 = vadd.f32 %v707_v10, %v706_v37  ;;  %v751_v50 = vsel %vm480_vm3, %v744_v44, %v750_v13  ;;  %v1203_v36 = vperm.slane %v1197_v35, 1  ;;  %v2260_v2 = vld [vmem:[#allocation16 + $0x38] sm:$0xff] }
 0x3a5   :  { %v752_v55 = vsel %vm482_vm4, %v745_v49, %v751_v50  ;;  %v1098_v30 = vpop.f32.mrf.mxu2  ;;  %v1097_v10 = vadd.f32 %v1096_v28, %v828_v7  ;;  %1617 = vmatpush.bf16.msrb.mxu0 %v2260_v2  ;;  %v2271_v49 = vld [vmem:[#allocation16 + $0x90] sm:$0xff]  ;;  %v823_v13 = vperm.slane %v2873_v32, 2  ;;  %v830_v22 = vperm.slane %v824_v18, 0 }
 0x3a6   :  { %v723_v24 = vpack.c.bf16 %v714_v45, %v714_v45  ;;  %v722_v48 = vpack.c.bf16 %v708_v46, %v708_v46  ;;  %v1344_v40 = vadd.f32 %v1343_v25, %v1203_v36  ;;  %v2259_v45 = vld [vmem:[#allocation16 + $0x30] sm:$0xff] }
 0x3a8   :  { %v739_v51 = vperm.slane %v723_v24, 0  ;;  %v738_v52 = vperm.slane %v722_v48, 0  ;;  %v1345_v26 = vpop.f32.mrf.mxu1 }
 0x3a9   :  { %1618 = vmatpush.bf16.msrb.mxu0 %v2259_v45 }
 0x3aa   :  { %v747_v53 = vunpack.c.l.b16 %v739_v51  ;;  %v746_v54 = vunpack.c.l.b16 %v738_v52  ;;  %v2258_v51 = vld [vmem:[#allocation16 + $0x28] sm:$0xff] }
 0x3ab   :  { %v1124_v29 = vpop.f32.mrf.mxu0 }
 0x3ac   :  { %v753_v57 = vsel %vm484_vm5, %v746_v54, %v752_v55  ;;  %v2270_v54 = vld [vmem:[#allocation16 + $0x88] sm:$0xff]  ;;  %v829_v55 = vperm.slane %v823_v13, 0 }
 0x3ad   :  { %v754_v12 = vsel %vm486_vm6, %v747_v53, %v753_v57  ;;  %1619 = vmatpush.bf16.msrb.mxu0 %v2258_v51  ;;  %v2269_v57 = vld [vmem:[#allocation16 + $0x80] sm:$0xff] }
 0x3ae   :  { %v755_v58 = vpack.c.b16 %v754_v12, %v754_v12  ;;  %v2256_v12 = vld [vmem:[#allocation16 + $0x18] sm:$0xff] }
 0x3b0   :  { %1108 = vmatmul.bf16.vlgmr.msra.gmra.mxu3 %v755_v58  ;;  %1134 = vmatmul.bf16.vlgmr.msrb.gmra.mxu2 %v755_v58 }
 0x3b1   :  { %1160 = vmatmul.bf16.vlgmr.msra.gmra.mxu0 %v755_v58  ;;  %1638 = vmatmul.bf16.vlgmr.msra.gmra.mxu1 %v755_v58 }
 0x3b2   :  { %1360 = vmatpush.bf16.msra.mxu3 %v2062_v14  ;;  %1643 = vmatpush.bf16.msrb.mxu2 %v2276_v31  ;;  %v1123_v14 = vadd.f32 %v1122_v27, %v829_v55 }
 0x3b3   :  { %1620 = vmatpush.bf16.msrb.mxu0 %v2257_v56 }
 0x3b6   :  { %1361 = vmatpush.bf16.msra.mxu3 %v2050_v61  ;;  %1644 = vmatpush.bf16.msrb.mxu2 %v2275_v33 }
 0x3b7   :  { %1621 = vmatpush.bf16.msrb.mxu0 %v2256_v12 }
 0x3ba   :  { %1362 = vmatpush.bf16.msra.mxu3 %v2038_v1 }
 0x3bb   :  { %1622 = vmatpush.bf16.msrb.mxu0 %v2255_v63 }
 0x3be   :  { %1363 = vmatpush.bf16.msra.mxu3 %v2026_v6  ;;  %v2254_v6 = vld [vmem:[#allocation16 + $0x8] sm:$0xff] }
 0x3bf   :  { %1623 = vmatpush.bf16.msrb.mxu0 %v2254_v6 }
 0x3c0   :  { %1147 = vmatmul.bf16.vlgmr.msrb.gmra.mxu3 %v2843_v0  ;;  %1355 = vmatmul.bf16.vlgmr.msra.gmra.mxu2 %v2740_v17 }
 0x3c2   :  { %1364 = vmatpush.bf16.msra.mxu3 %v2014_v4 }
 0x3c6   :  { %1365 = vmatpush.bf16.msra.mxu3 %v2002_v16  ;;  %v2253_v16 = vld [vmem:[#allocation16] sm:$0xff] }
 0x3c7   :  { %1624 = vmatpush.bf16.msrb.mxu0 %v2253_v16 }
 0x3ca   :  { %1366 = vmatpush.bf16.msra.mxu3 %v1990_v20  ;;  %v1199_v20 = vperm.slane %v2873_v32, 5 }
 0x3cc   :  { %v1205_v28 = vperm.slane %v1199_v20, 1 }
 0x3ce   :  { %1367 = vmatpush.bf16.msra.mxu3 %v1978_v23 }
 0x3d1   :  { %1368 = vmatmul.bf16.vlgmr.msra.gmra.mxu3 %v2740_v17  ;;  %v2274_v17 = vld [vmem:[#allocation16 + $0xa8] sm:$0xff] }
 0x3d2   :  { %1645 = vmatpush.bf16.msrb.mxu2 %v2274_v17 }
 0x3d6   :  { %1646 = vmatpush.bf16.msrb.mxu2 %v2273_v39 }
 0x3da   :  { %1647 = vmatpush.bf16.msrb.mxu2 %v2272_v43 }
 0x3de   :  { %1648 = vmatpush.bf16.msrb.mxu2 %v2271_v49 }
 0x3e2   :  { %1649 = vmatpush.bf16.msrb.mxu2 %v2270_v54  ;;  %v2296_v54 = vld [vmem:[%s2907_s10] ss:$0 sm:$0xff] }
 0x3e6   :  { %1650 = vmatpush.bf16.msrb.mxu2 %v2269_v57 }
 0x3e9   :  { %1651 = vmatmul.bf16.vlgmr.msrb.gmra.mxu2 %v2843_v0 }
 0x42e   :  { %v2877_v37 = vpop.f32.mrf.mxu0  ;;  %v2879_v38 = vpop.f32.mrf.mxu1 }
 0x433   :  { %v1109_v41 = vpop.f32.mrf.mxu3  ;;  %v1135_v42 = vpop.f32.mrf.mxu2 }
 0x434   :  { %v1110_v44 = vadd.f32 %v1109_v41, %v1097_v10  ;;  %v1136_v1 = vadd.f32 %v1135_v42, %v1123_v14 }
 0x436   :  { %v1373_v46 = vadd.f32 %v1344_v40, %v1110_v44  ;;  %v1163_v24 = vpop.f32.mrf.mxu0  ;;  %v1641_v48 = vpop.f32.mrf.mxu1 }
 0x438   :  { %v2063_v50 = vmul.f32 -1.442695, %v1373_v46 }
 0x43a   :  { %2331 = vpow2.f32 %v2063_v50 }
 0x43b   :  { %v1111_v52 = vpop.f32.mrf.mxu3  ;;  %v1137_v53 = vpop.f32.mrf.mxu2 }
 0x440   :  { %v2332_v58 = vpop.eup %2331 }
 0x441   :  { %v1377_v60 = vadd.f32 1.0, %v2332_v58 }
 0x443   :  { %2333 = vrcp.f32 %v1377_v60  ;;  %v1148_v61 = vpop.f32.mrf.mxu3  ;;  %v1356_v62 = vpop.f32.mrf.mxu2  ;;  %v1389_v25 = vand.u32 2147483648, %v1377_v60  ;;  %vm1383_vm9 = vweird.f32 %v1377_v60  ;;  %v1387_v26 = vand.u32 2147483647, %v1377_v60 }
 0x444   :  { %v1357_v47 = vadd.f32 %v1356_v62, %v1204_v59  ;;  %v1149_v33 = vadd.f32 %v1148_v61, %v830_v22 }
 0x445   :  { %v1390_v31 = vor.u32 1.1754944e-38, %v1389_v25  ;;  %vm1388_vm11 = vcmp.eq.f32.partialorder %v1387_v26, 8.507059e+37 }
 0x446   :  { %v1393_v3 = vadd.f32 %v1357_v47, %v1136_v1  ;;  %v1162_v7 = vadd.f32 %v2877_v37, %v1149_v33  ;;  %v2341_v37 = vld [vmem:[#allocation5] sm:$0xff] }
 0x448   :  { %v2064_v8 = vmul.f32 -1.442695, %v1393_v3 }
 0x449   :  { %v2334_v9 = vpop.eup %2333 }
 0x44a   :  { %2335 = vpow2.f32 %v2064_v8  ;;  %v1379_v4 = vmul.f32 %v2334_v9, %v1377_v60  ;;  %vm1384_vm8 = vweird.f32 %v2334_v9 }
 0x44b   :  { %v1150_v15 = vpop.f32.mrf.mxu3  ;;  %v1358_v5 = vpop.f32.mrf.mxu2  ;;  %vm1385_vm10 = vmor %vm1383_vm9, %vm1384_vm8 }
 0x44c   :  { %v1380_v19 = vsub.f32 1.0, %v1379_v4 }
 0x44e   :  { %v1381_v21 = vmul.f32 %v2334_v9, %v1380_v19 }
 0x450   :  { %v2336_v0 = vpop.eup %2335  ;;  %v1382_v23 = vadd.f32 %v2334_v9, %v1381_v21 }
 0x451   :  { %v1397_v27 = vadd.f32 1.0, %v2336_v0 }
 0x452   :  { %v1386_v29 = vsel %vm1385_vm10, %v2334_v9, %v1382_v23 }
 0x453   :  { %2337 = vrcp.f32 %v1397_v27  ;;  %v1391_v32 = vsel %vm1388_vm11, %v1390_v31, %v1386_v29  ;;  %v1409_v40 = vand.u32 2147483648, %v1397_v27  ;;  %v1407_v42 = vand.u32 2147483647, %v1397_v27 }
 0x454   :  { %v1369_v30 = vpop.f32.mrf.mxu3  ;;  %vm1403_vm13 = vweird.f32 %v1397_v27 }
 0x455   :  { %v1370_v34 = vadd.f32 %v1369_v30, %v1205_v28  ;;  %v1410_v44 = vor.u32 1.1754944e-38, %v1409_v40  ;;  %vm1408_vm15 = vcmp.eq.f32.partialorder %v1407_v42, 8.507059e+37 }
 0x457   :  { %v1413_v35 = vmul.f32 %v1391_v32, %v1370_v34 }
 0x459   :  { %v2338_v17 = vpop.eup %2337  ;;  %v1414_v39 = vadd.f32 %v1413_v35, %v1162_v7 }
 0x45a   :  { %v1399_v36 = vmul.f32 %v2338_v17, %v1397_v27  ;;  %vm1404_vm12 = vweird.f32 %v2338_v17 }
 0x45b   :  { %2339 = vtanh.f32 %v1414_v39  ;;  %vm1405_vm14 = vmor %vm1403_vm13, %vm1404_vm12 }
 0x45c   :  { %v1400_v2 = vsub.f32 1.0, %v1399_v36  ;;  %v1371_v10 = vpop.f32.mrf.mxu3 }
 0x45e   :  { %v1401_v41 = vmul.f32 %v2338_v17, %v1400_v2 }
 0x460   :  { %v1402_v43 = vadd.f32 %v2338_v17, %v1401_v41 }
 0x461   :  { %v2340_v48 = vpop.eup %2339 }
 0x462   :  { %v1406_v45 = vsel %vm1405_vm14, %v2338_v17, %v1402_v43 }
 0x463   :  { %v1411_v46 = vsel %vm1408_vm15, %v1410_v44, %v1406_v45 }
 0x464   :  { %v1416_v24 = vsub.f32 1.0, %v1411_v46  ;;  %v1418_v13 = vmul.f32 %v2341_v37, %v1411_v46 }
 0x466   :  { %v1417_v49 = vmul.f32 %v2340_v48, %v1416_v24 }
 0x468   :  { %v1419_v50 = vadd.f32 %v1418_v13, %v1417_v49 }
 0x46a   :  { %v1420_v51 = vpack.c.bf16 %v1419_v50, %v1419_v50  ;;  %1657 = vst [vmem:[#allocation18] sm:$0xff] %v1419_v50 }
 0x46b   :  { %1679 = dma.vmem_to_hbm [thread:$0]  %s1675_s1, 128, %s1677_s26, [#allocation19]  }
 0x46c   :  { %1625 = vmatmul.bf16.vlgmr.msrb.gmra.mxu0 %v1420_v51  ;;  %v1652_v52 = vpop.f32.mrf.mxu2 }
 0x474   :  { %v1654_v53 = vpop.f32.mrf.mxu2 }
 0x4e9   :  { %v1626_v55 = vpop.f32.mrf.mxu0 }
 0x4ea   :  { %v1627_v11 = vadd.f32 %v2296_v54, %v1626_v55 }
 0x4ec   :  { %v1640_v56 = vadd.f32 %v2879_v38, %v1627_v11 }
 0x4ee   :  { %v1653_v57 = vadd.f32 %v1652_v52, %v1640_v56 }
 0x4f0   :  { %1656 = vst [vmem:[#allocation17] sm:$0xff] %v1653_v57 }
 0x4f1   :  { %v1628_v12 = vpop.f32.mrf.mxu0  ;;  %1668 = dma.vmem_to_hbm [thread:$0]  %s1664_s13, 128, %s1666_s15, [#allocation4]  }
 0x4f2   :  { %2616 = dma.done.wait [#allocation4], 128  }
 0x4f3   :  { %2617 = vsyncadd [#allocation4], 4294967168 }
 0x4f4   :  { %2618 = dma.done.wait [#allocation19], 128  }
 0x4f5   :  { %2619 = vsyncadd [#allocation19], 4294967168 }
 0x4f6   :  { %1688 = vsyncpa [#allocation3], 1 }
 0x4f7   :  { %1689 = vsyncpa [#allocation6], 1 }
 0x4f8   :  { %1690 = vsyncpa [#allocation9], 1 }
 0x4f9   :  { %1691 = vsyncpa [#allocation12], 1 }
 0x4fa   :  { %1692 = vsyncpa [#allocation15], 1 }
 0x4fb   :  { %1693 = vsyncpa [#allocation4], 1 }
 0x4fc   :  { %1694 = vsyncpa [#allocation19], 1 }

</bundles_post_ra>
